<compile_context>
chip_gen: v7x
topology: tpu7x:2x2x1
jax: 0.10.0
libtpu: 0.0.40
codegen_flags: <defaults>
</compile_context>

<pallas_src>
import jax
import jax.numpy as jnp
import numpy as np
from jax import lax
from jax.experimental import pallas as pl
from jax.experimental.pallas import tpu as pltpu


# ------------------------------------------------------------------ tiling

def _vmem_limit_bytes():
    """Per-call VMEM limit: stay well inside the physical per-core capacity."""
    cap = 128 * 1024 * 1024
    try:
        info = pltpu.get_tpu_info()
        cap = int(getattr(info, "vmem_capacity_bytes", cap) or cap)
    except Exception:
        pass
    if cap <= 64 * 1024 * 1024:            # v7x-class: 64 MiB physical per core
        return 48 * 1024 * 1024
    return 96 * 1024 * 1024                # v5e / v6e: 128 MiB physical


def _tile_bytes_estimate(TH, W, Cin, C, E, P, in_isz, out_isz):
    """Rough per-grid-step VMEM footprint (intermediates counted as f32)."""
    M0, Mt = (TH + 2) * W, TH * W
    b = 2 * M0 * Cin * in_isz                        # dbl-buffered input rows (+halo)
    b += 2 * Mt * P * E * out_isz                    # dbl-buffered output tile
    b += 2 * (Cin * C + 9 * C * E + (6 * C * C if P == 2 else 0)) * in_isz  # weights
    b += 4 * M0 * C * 4                              # squeeze result + rolled taps
    b += 2 * M0 * P * C * 4                          # expand input (+ pre-mask copy)
    b += (P + 1) * M0 * 3 * C * 4                    # tap concats + parity stack
    b += P * Mt * 3 * C * 4                          # per-dh matmul operand
    b += 2 * P * Mt * E * 4                          # f32 accumulator + activation
    return b


def _pick_tile_h(H, W, Cin, C, E, P, in_isz, out_isz, budget):
    """Largest divisor TH of H whose per-step footprint fits the byte budget."""
    best = 1
    for th in range(1, H + 1):
        if H % th == 0 and _tile_bytes_estimate(th, W, Cin, C, E, P,
                                                in_isz, out_isz) <= budget:
            best = th
    return best


# ------------------------------------------------------------------ kernel

def _make_fire_up_kernel(stride2):
    """Fused squeeze + [upconv] + expand1x1||expand3x3 forward for one row tile."""

    def kernel(x_top_ref, x_ref, x_bot_ref, w_sq_ref, b_sq_ref, *rest):
        if stride2:
            w_up_ref, b_up_ref, w_ex_ref, b_ex_ref, o_ref = rest
        else:
            w_ex_ref, b_ex_ref, o_ref = rest

        _, TH, W, Cin = x_ref.shape
        C = w_sq_ref.shape[1]              # squeeze planes
        E = w_ex_ref.shape[2]              # expand1x1 + expand3x3 planes
        THp = TH + 2                       # rows incl. 1-row halo on each side
        M0, Mt = THp * W, TH * W
        cdt = x_ref.dtype                  # MXU input dtype (bf16 or f32)

        hi, nh = pl.program_id(1), pl.num_programs(1)
        top_valid = (hi > 0).astype(jnp.float32)       # 0/1: halo row inside image?
        bot_valid = (hi < nh - 1).astype(jnp.float32)

        # ---- squeeze 1x1 + ReLU: separate matmuls for halo rows / main rows --
        # (only the C-wide results are concatenated later; Cin/C x cheaper than
        #  concatenating the Cin-wide inputs before the matmul.)
        w_sq, b_sq = w_sq_ref[...], b_sq_ref[...]

        def squeeze(v2d):
            r = jnp.dot(v2d, w_sq, preferred_element_type=jnp.float32)
            return jnp.maximum(r + b_sq, 0.0)

        s_top = squeeze(x_top_ref[0, 0])                   # (W, C)  f32
        s_mid = squeeze(x_ref[0].reshape(Mt, Cin))         # (Mt, C) f32
        s_bot = squeeze(x_bot_ref[0, 0])                   # (W, C)  f32

        # ---- width +-1 taps: XLU roll + W-edge mask (no pad/concat/slices) ---
        ridx = lax.broadcasted_iota(jnp.int32, (M0, 1), 0)
        col = ridx % W
        not_first, not_last = col != 0, col != (W - 1)

        def tap_left(v):        # v[j-1] at position j, zero at w == 0
            r = pltpu.roll(v, shift=1, axis=0)
            return jnp.where(not_first, r, jnp.zeros_like(r))

        def tap_right(v):       # v[j+1] at position j, zero at w == W - 1
            r = pltpu.roll(v, shift=M0 - 1, axis=0)
            return jnp.where(not_last, r, jnp.zeros_like(r))

        if stride2:
            # ---- ConvTranspose2d k=[1,4] s=[1,2] p=[0,1] + ReLU --------------
            # one (M0, 3C) @ (3C, 2C) matmul with structured-zero weights; the
            # output packs even (col 2j) / odd (col 2j+1) columns on the lanes.
            s = jnp.concatenate([s_top, s_mid, s_bot], axis=0)          # (M0, C) f32
            xu = jnp.concatenate([tap_left(s).astype(cdt), s.astype(cdt),
                                  tap_right(s).astype(cdt)], axis=-1)   # (M0, 3C)
            act = jnp.dot(xu, w_up_ref[...], preferred_element_type=jnp.float32)
            act = jnp.maximum(act + b_up_ref[...], 0.0)                 # (M0, 2C) f32
            # zero halo rows that fall outside the image (3x3 zero padding);
            # one broadcast multiply by a (M0,1) row mask (interior rows = 1).
            rmask = jnp.where(ridx < W, top_valid,
                              jnp.where(ridx >= W + Mt, bot_valid, 1.0))
            a = act * rmask
            even, odd = a[:, :C], a[:, C:]
            # expand taps per output-column parity (weights shared):
            #   col 2j  : u[2j-1], u[2j],  u[2j+1] = odd[j-1], even[j], odd[j]
            #   col 2j+1: u[2j],  u[2j+1], u[2j+2] = even[j],  odd[j],  even[j+1]
            ev, od = even.astype(cdt), odd.astype(cdt)
            taps = jnp.stack(
                [jnp.concatenate([tap_left(odd).astype(cdt), ev, od], axis=-1),
                 jnp.concatenate([ev, od, tap_right(even).astype(cdt)], axis=-1)],
                axis=0)                                                  # (2, M0, 3C)
        else:
            # halo rows outside the image are zeroed; only the two W-row halo
            # groups are scaled — never a full-tile select for interior tiles.
            a = jnp.concatenate([s_top * top_valid, s_mid, s_bot * bot_valid],
                                axis=0)                                  # (M0, C) f32
            taps = jnp.concatenate([tap_left(a).astype(cdt), a.astype(cdt),
                                    tap_right(a).astype(cdt)],
                                   axis=-1)[None]                        # (1, M0, 3C)

        # ---- fused expand1x1 || expand3x3 + ReLU -----------------------------
        # height taps accumulate over 3 matmuls of (P*Mt, 3C) @ (3C, E); both
        # stride-2 parities are stacked along M so the expand weights are reused.
        P = taps.shape[0]
        acc = None
        for dh in range(3):
            xd = taps[:, dh * W:dh * W + Mt, :].reshape(P * Mt, 3 * C)
            d = jnp.dot(xd, w_ex_ref[dh], preferred_element_type=jnp.float32)
            acc = d if acc is None else acc + d
        y = jnp.maximum(acc + b_ex_ref[...], 0.0).reshape(P, TH, W, E)

        # per-parity lane-slice stores: no channel concat / output-tile copy.
        for p in range(P):
            o_ref[0, :, :, pl.ds(p * E, E)] = y[p].astype(o_ref.dtype)

    return kernel


# ------------------------------------------------------------------ params

def init_params(key, inplanes, sq, e1, e3):
    """PyTorch-layout parameters of the FireUp module."""
    ks = jax.random.split(key, 8)
    return dict(
        w_sq=0.1 * jax.random.normal(ks[0], (sq, inplanes, 1, 1), jnp.float32),
        b_sq=0.1 * jax.random.normal(ks[1], (sq,), jnp.float32),
        w_up=0.1 * jax.random.normal(ks[2], (sq, sq, 1, 4), jnp.float32),   # (in,out,1,4)
        b_up=0.1 * jax.random.normal(ks[3], (sq,), jnp.float32),
        w_e1=0.1 * jax.random.normal(ks[4], (e1, sq, 1, 1), jnp.float32),
        b_e1=0.1 * jax.random.normal(ks[5], (e1,), jnp.float32),
        w_e3=0.1 * jax.random.normal(ks[6], (e3, sq, 3, 3), jnp.float32),
        b_e3=0.1 * jax.random.normal(ks[7], (e3,), jnp.float32),
    )


def prepare_kernel_params(tp, stride, compute_dtype):
    """Re-layout torch weights into the folded/structured matmul weights."""
    f32 = jnp.float32
    w_sq = jnp.transpose(tp['w_sq'][:, :, 0, 0]).astype(compute_dtype)       # (Cin, C)
    b_sq = tp['b_sq'].astype(f32).reshape(1, -1)
    C = w_sq.shape[1]

    # Folded expand weight: (3, 3C, E1+E3) — per dh, rows are the du=-1/0/+1 taps;
    # the 1x1 weight occupies the e1 columns of the centre (dh=1, du=1) tap.
    w1x1 = jnp.transpose(tp['w_e1'][:, :, 0, 0]).astype(f32)                 # (C, E1)
    w3x3 = jnp.transpose(tp['w_e3'], (2, 3, 1, 0)).astype(f32)               # (3,3,C,E3)
    E1 = w1x1.shape[1]
    zeros_e1 = jnp.zeros((C, E1), f32)
    blocks = []
    for dh in range(3):
        row_blocks = []
        for du in range(3):
            e1_blk = w1x1 if (dh == 1 and du == 1) else zeros_e1
            row_blocks.append(jnp.concatenate([e1_blk, w3x3[dh, du]], axis=1))
        blocks.append(jnp.concatenate(row_blocks, axis=0))                    # (3C, E)
    w_ex = jnp.stack(blocks, axis=0).astype(compute_dtype)                    # (3, 3C, E)
    b_ex = jnp.concatenate([tp['b_e1'], tp['b_e3']]).astype(f32).reshape(1, -1)

    kp = dict(w_sq=w_sq, b_sq=b_sq, w_ex=w_ex, b_ex=b_ex)

    if stride == 2:
        # ConvTranspose2d taps: out col 2j = s_j@w1 + s_{j-1}@w3 ;
        #                       out col 2j+1 = s_{j+1}@w0 + s_j@w2.
        wk = tp['w_up'][:, :, 0, :].astype(f32)            # (Cin=C, Cout=C, 4)
        w0, w1, w2, w3 = (wk[:, :, k] for k in range(4))
        z = jnp.zeros((C, C), f32)
        w_up = jnp.concatenate([
            jnp.concatenate([w3, z], axis=1),   # rows for s_{j-1}
            jnp.concatenate([w1, w2], axis=1),  # rows for s_j
            jnp.concatenate([z, w0], axis=1),   # rows for s_{j+1}
        ], axis=0).astype(compute_dtype)        # (3C, 2C), even | odd output cols
        b_up = jnp.concatenate([tp['b_up'], tp['b_up']]).astype(f32).reshape(1, -1)
        kp.update(w_up=w_up, b_up=b_up)
    return kp


# ------------------------------------------------------------------ wrappers

def fire_up_forward(x_nhwc, torch_params, stride, *, compute_dtype=jnp.bfloat16,
                    out_dtype=None, tile_h=None):
    """NHWC-native FireUp forward; returns (N, H, W_out, e1+e3) in out_dtype.

    Keep activations NHWC across chained Fire/FireUp blocks; only use the
    fire_up_forward_nchw shim at a PyTorch-layout boundary.
    """
    N, H, W, Cin = x_nhwc.shape
    stride2 = (stride == 2)
    if out_dtype is None:
        out_dtype = compute_dtype           # bf16 output on the fast path (HBM-bound)
    kp = prepare_kernel_params(torch_params, stride, compute_dtype)
    C = kp['w_sq'].shape[1]
    E = kp['w_ex'].shape[2]
    P = 2 if stride2 else 1

    in_isz = jnp.dtype(compute_dtype).itemsize
    out_isz = jnp.dtype(out_dtype).itemsize
    vmem_limit = _vmem_limit_bytes()
    if tile_h is None:
        tile_h = _pick_tile_h(H, W, Cin, C, E, P, in_isz, out_isz,
                              budget=int(0.6 * vmem_limit))
    TH = tile_h
    assert H % TH == 0, (H, TH)
    nH = H // TH

    x = x_nhwc.astype(compute_dtype)

    # One halo row above / below each H-tile (zeros at the image boundary):
    # tiny (N, nH, W, Cin) side arrays instead of padding the activation in HBM.
    zrow = jnp.zeros((N, 1, W, Cin), compute_dtype)
    if nH > 1:
        x_top = jnp.concatenate([zrow, x[:, TH - 1:H - 1:TH]], axis=1)
        x_bot = jnp.concatenate([x[:, TH:H:TH], zrow], axis=1)
    else:
        x_top, x_bot = zrow, zrow

    in_specs = [
        pl.BlockSpec((1, 1, W, Cin), lambda n, h: (n, h, 0, 0)),     # top halo row
        pl.BlockSpec((1, TH, W, Cin), lambda n, h: (n, h, 0, 0)),    # main rows
        pl.BlockSpec((1, 1, W, Cin), lambda n, h: (n, h, 0, 0)),     # bottom halo row
        pl.BlockSpec((Cin, C), lambda n, h: (0, 0)),                 # w_sq
        pl.BlockSpec((1, C), lambda n, h: (0, 0)),                   # b_sq
    ]
    args = [x_top, x, x_bot, kp['w_sq'], kp['b_sq']]
    if stride2:
        in_specs += [pl.BlockSpec((3 * C, 2 * C), lambda n, h: (0, 0)),
                     pl.BlockSpec((1, 2 * C), lambda n, h: (0, 0))]
        args += [kp['w_up'], kp['b_up']]
    in_specs += [pl.BlockSpec((3, 3 * C, E), lambda n, h: (0, 0, 0)),
                 pl.BlockSpec((1, E), lambda n, h: (0, 0))]
    args += [kp['w_ex'], kp['b_ex']]

    M = N * H * W
    flops = 2 * M * Cin * C + 2 * M * P * 3 * (3 * C) * E
    if stride2:
        flops += 2 * M * (3 * C) * (2 * C)
    bytes_accessed = (int(x.size) * in_isz + M * P * E * out_isz
                      + sum(int(v.size) * v.dtype.itemsize for v in kp.values()))

    out = pl.pallas_call(
        _make_fire_up_kernel(stride2),
        out_shape=jax.ShapeDtypeStruct((N, H, W, P * E), out_dtype),
        grid=(N, nH),
        in_specs=in_specs,
        out_specs=pl.BlockSpec((1, TH, W, P * E), lambda n, h: (n, h, 0, 0)),
        compiler_params=pltpu.CompilerParams(
            dimension_semantics=("parallel", "parallel"),
            vmem_limit_bytes=vmem_limit),
        cost_estimate=pl.CostEstimate(flops=int(flops), transcendentals=0,
                                      bytes_accessed=int(bytes_accessed)),
    )(*args)

    if stride2:
        # packed (N, H, W, 2E) -> interleaved (N, H, 2W, E): flat-memory identity.
        out = out.reshape(N, H, 2 * W, E)
    return out


def fire_up_forward_nchw(x_nchw, torch_params, stride, **kw):
    """PyTorch-layout compatibility shim (adds the NCHW<->NHWC transposes)."""
    y = fire_up_forward(jnp.transpose(x_nchw, (0, 2, 3, 1)),
                        torch_params, stride, **kw)
    return jnp.transpose(y, (0, 3, 1, 2))


# ------------------------------------------------------------------ reference

def reference_forward(x, p, stride):
    """Pure-JAX (lax.conv) reference matching the PyTorch module exactly (NCHW)."""
    dn = ('NCHW', 'OIHW', 'NCHW')

    def conv(x, w, b, pad):
        y = lax.conv_general_dilated(x, w, (1, 1), pad, dimension_numbers=dn)
        return jnp.maximum(y + b.reshape(1, -1, 1, 1), 0.0)

    x = conv(x, p['w_sq'], p['b_sq'], 'VALID')
    if stride == 2:
        wt = p['w_up']                                              # (in, out, 1, 4)
        w_eq = jnp.transpose(wt, (1, 0, 2, 3))[:, :, ::-1, ::-1]
        y = lax.conv_general_dilated(x, w_eq, (1, 1),
                                     padding=[(0, 0), (2, 2)],
                                     lhs_dilation=(1, 2),
                                     dimension_numbers=dn)
        x = jnp.maximum(y + p['b_up'].reshape(1, -1, 1, 1), 0.0)
    e1 = conv(x, p['w_e1'], p['b_e1'], 'VALID')
    e3 = conv(x, p['w_e3'], p['b_e3'], [(1, 1), (1, 1)])
    return jnp.concatenate([e1, e3], axis=1)


# ------------------------------------------------------------------ main

if __name__ == "__main__":
    N, inplanes, H, W = 2, 8, 16, 16
    squeeze_planes, expand1x1_planes, expand3x3_planes = 4, 8, 8

    key = jax.random.PRNGKey(0)
    k_x, k_p = jax.random.split(key)
    x = jax.random.normal(k_x, (N, inplanes, H, W), jnp.float32)
    params = init_params(k_p, inplanes, squeeze_planes,
                         expand1x1_planes, expand3x3_planes)

    for stride in (2, 1):
        ref = jax.block_until_ready(reference_forward(x, params, stride))

        # f32 compute + f32 output, forced multi-tile grid
        # (exercises halo rows, boundary masking and the roll-based taps).
        out_f32 = jax.block_until_ready(
            fire_up_forward_nchw(x, params, stride,
                                 compute_dtype=jnp.float32, tile_h=4))
        assert out_f32.shape == ref.shape, (out_f32.shape, ref.shape)
        np.testing.assert_allclose(np.asarray(out_f32), np.asarray(ref),
                                   rtol=1e-4, atol=1e-4)

        # bf16 MXU fast path: bf16 activations/weights/output, f32 accumulation.
        out_bf16 = jax.block_until_ready(
            fire_up_forward_nchw(x, params, stride,
                                 compute_dtype=jnp.bfloat16))
        assert out_bf16.shape == ref.shape, (out_bf16.shape, ref.shape)
        np.testing.assert_allclose(np.asarray(out_bf16.astype(jnp.float32)),
                                   np.asarray(ref), rtol=3e-2, atol=2e-2)

    print("KERNEL_OK")
</pallas_src>

<mosaic_0001>
module attributes {stable_mosaic.version = 11 : i64} {
  func.func @kernel(%arg0: i32, %arg1: i32, %arg2: memref<1x1x16x8xf32, #tpu.memory_space<vmem>>, %arg3: memref<1x4x16x8xf32, #tpu.memory_space<vmem>>, %arg4: memref<1x1x16x8xf32, #tpu.memory_space<vmem>>, %arg5: memref<8x4xf32, #tpu.memory_space<vmem>>, %arg6: memref<1x4xf32, #tpu.memory_space<vmem>>, %arg7: memref<12x8xf32, #tpu.memory_space<vmem>>, %arg8: memref<1x8xf32, #tpu.memory_space<vmem>>, %arg9: memref<3x12x16xf32, #tpu.memory_space<vmem>>, %arg10: memref<1x16xf32, #tpu.memory_space<vmem>>, %arg11: memref<1x4x16x32xf32, #tpu.memory_space<vmem>>) attributes {dimension_semantics = [#tpu.dimension_semantics<parallel>, #tpu.dimension_semantics<parallel>], iteration_bounds = array<i64: 2, 4>, scalar_prefetch = 0 : i64, scratch_operands = 0 : i64, tpu.core_type = #tpu.core_type<tc>, window_params = [{transform_indices = @transform_0, window_bounds = array<i64: 1, 1, 16, 8>}, {transform_indices = @transform_1, window_bounds = array<i64: 1, 4, 16, 8>}, {transform_indices = @transform_2, window_bounds = array<i64: 1, 1, 16, 8>}, {pipeline_mode = #tpu.pipeline_mode<synchronous>, transform_indices = @transform_3, window_bounds = array<i64: 8, 4>}, {pipeline_mode = #tpu.pipeline_mode<synchronous>, transform_indices = @transform_4, window_bounds = array<i64: 1, 4>}, {pipeline_mode = #tpu.pipeline_mode<synchronous>, transform_indices = @transform_5, window_bounds = array<i64: 12, 8>}, {pipeline_mode = #tpu.pipeline_mode<synchronous>, transform_indices = @transform_6, window_bounds = array<i64: 1, 8>}, {pipeline_mode = #tpu.pipeline_mode<synchronous>, transform_indices = @transform_7, window_bounds = array<i64: 3, 12, 16>}, {pipeline_mode = #tpu.pipeline_mode<synchronous>, transform_indices = @transform_8, window_bounds = array<i64: 1, 16>}, {transform_indices = @transform_9, window_bounds = array<i64: 1, 4, 16, 32>}]} {
    %c0_i32 = arith.constant 0 : i32
    %0 = arith.cmpi sgt, %arg1, %c0_i32 : i32
    %1 = arith.extui %0 : i1 to i32
    %2 = arith.sitofp %1 : i32 to f32
    %c3_i32 = arith.constant 3 : i32
    %3 = arith.cmpi slt, %arg1, %c3_i32 : i32
    %4 = arith.extui %3 : i1 to i32
    %5 = arith.sitofp %4 : i32 to f32
    %c0 = arith.constant 0 : index
    %c0_0 = arith.constant 0 : index
    %6 = vector.load %arg5[%c0, %c0_0] : memref<8x4xf32, #tpu.memory_space<vmem>>, vector<8x4xf32>
    %c0_1 = arith.constant 0 : index
    %c0_2 = arith.constant 0 : index
    %7 = vector.load %arg6[%c0_1, %c0_2] : memref<1x4xf32, #tpu.memory_space<vmem>>, vector<1x4xf32>
    %c0_3 = arith.constant 0 : index
    %c0_4 = arith.constant 0 : index
    %c0_5 = arith.constant 0 : index
    %c0_6 = arith.constant 0 : index
    %8 = vector.load %arg2[%c0_3, %c0_4, %c0_5, %c0_6] : memref<1x1x16x8xf32, #tpu.memory_space<vmem>>, vector<1x1x16x8xf32>
    %9 = vector.shape_cast %8 : vector<1x1x16x8xf32> to vector<16x8xf32>
    %cst = arith.constant dense<0.000000e+00> : vector<16x4xf32>
    %10 = tpu.matmul %9, %6, %cst {dimension_numbers = #tpu.dot_dimension_numbers<[1], [0], [0], [1], [0, 0, 1, 1], [], []>} : vector<16x8xf32>, vector<8x4xf32>, vector<16x4xf32> -> vector<16x4xf32>
    %11 = vector.broadcast %7 : vector<1x4xf32> to vector<16x4xf32>
    %12 = arith.addf %10, %11 : vector<16x4xf32>
    %cst_7 = arith.constant 0.000000e+00 : f32
    %13 = vector.broadcast %cst_7 : f32 to vector<16x4xf32>
    %14 = arith.maximumf %12, %13 : vector<16x4xf32>
    %c0_8 = arith.constant 0 : index
    %c0_9 = arith.constant 0 : index
    %c0_10 = arith.constant 0 : index
    %c0_11 = arith.constant 0 : index
    %15 = vector.load %arg3[%c0_8, %c0_9, %c0_10, %c0_11] : memref<1x4x16x8xf32, #tpu.memory_space<vmem>>, vector<1x4x16x8xf32>
    %16 = vector.shape_cast %15 : vector<1x4x16x8xf32> to vector<4x16x8xf32>
    %17 = vector.shape_cast %16 : vector<4x16x8xf32> to vector<64x8xf32>
    %cst_12 = arith.constant dense<0.000000e+00> : vector<64x4xf32>
    %18 = tpu.matmul %17, %6, %cst_12 {dimension_numbers = #tpu.dot_dimension_numbers<[1], [0], [0], [1], [0, 0, 1, 1], [], []>} : vector<64x8xf32>, vector<8x4xf32>, vector<64x4xf32> -> vector<64x4xf32>
    %19 = vector.broadcast %7 : vector<1x4xf32> to vector<64x4xf32>
    %20 = arith.addf %18, %19 : vector<64x4xf32>
    %cst_13 = arith.constant 0.000000e+00 : f32
    %21 = vector.broadcast %cst_13 : f32 to vector<64x4xf32>
    %22 = arith.maximumf %20, %21 : vector<64x4xf32>
    %c0_14 = arith.constant 0 : index
    %c0_15 = arith.constant 0 : index
    %c0_16 = arith.constant 0 : index
    %c0_17 = arith.constant 0 : index
    %23 = vector.load %arg4[%c0_14, %c0_15, %c0_16, %c0_17] : memref<1x1x16x8xf32, #tpu.memory_space<vmem>>, vector<1x1x16x8xf32>
    %24 = vector.shape_cast %23 : vector<1x1x16x8xf32> to vector<16x8xf32>
    %cst_18 = arith.constant dense<0.000000e+00> : vector<16x4xf32>
    %25 = tpu.matmul %24, %6, %cst_18 {dimension_numbers = #tpu.dot_dimension_numbers<[1], [0], [0], [1], [0, 0, 1, 1], [], []>} : vector<16x8xf32>, vector<8x4xf32>, vector<16x4xf32> -> vector<16x4xf32>
    %26 = vector.broadcast %7 : vector<1x4xf32> to vector<16x4xf32>
    %27 = arith.addf %25, %26 : vector<16x4xf32>
    %cst_19 = arith.constant 0.000000e+00 : f32
    %28 = vector.broadcast %cst_19 : f32 to vector<16x4xf32>
    %29 = arith.maximumf %27, %28 : vector<16x4xf32>
    %30 = tpu.iota {dimensions = array<i32: 0>} : vector<96x1xi32>
    %c16_i32 = arith.constant 16 : i32
    %c0_i32_20 = arith.constant 0 : i32
    %31 = arith.cmpi eq, %c16_i32, %c0_i32_20 : i32
    %c1_i32 = arith.constant 1 : i32
    %32 = arith.select %31, %c1_i32, %c16_i32 : i32
    %33 = vector.broadcast %32 : i32 to vector<96x1xi32>
    %34 = arith.remsi %30, %33 : vector<96x1xi32>
    %c0_i32_21 = arith.constant 0 : i32
    %35 = vector.broadcast %c0_i32_21 : i32 to vector<96x1xi32>
    %36 = arith.cmpi ne, %34, %35 : vector<96x1xi32>
    %c0_i32_22 = arith.constant 0 : i32
    %37 = vector.broadcast %c0_i32_22 : i32 to vector<96x1xi32>
    %38 = arith.cmpi slt, %34, %37 : vector<96x1xi32>
    %c0_i32_23 = arith.constant 0 : i32
    %39 = arith.cmpi slt, %32, %c0_i32_23 : i32
    %40 = vector.broadcast %39 : i1 to vector<96x1xi1>
    %41 = vector.broadcast %40 : vector<96x1xi1> to vector<96x1xi1>
    %42 = arith.xori %38, %41 : vector<96x1xi1>
    %43 = arith.andi %42, %36 : vector<96x1xi1>
    %44 = vector.broadcast %32 : i32 to vector<96x1xi32>
    %45 = arith.addi %34, %44 : vector<96x1xi32>
    %46 = arith.select %43, %45, %34 : vector<96x1xi1>, vector<96x1xi32>
    %c0_i32_24 = arith.constant 0 : i32
    %47 = vector.broadcast %c0_i32_24 : i32 to vector<96x1xi32>
    %48 = arith.cmpi ne, %46, %47 : vector<96x1xi32>
    %c15_i32 = arith.constant 15 : i32
    %49 = vector.broadcast %c15_i32 : i32 to vector<96x1xi32>
    %50 = arith.cmpi ne, %46, %49 : vector<96x1xi32>
    %51 = tpu.concatenate %14, %22, %29 in 0 : vector<16x4xf32>, vector<64x4xf32>, vector<16x4xf32> -> vector<96x4xf32>
    %c1_i32_25 = arith.constant 1 : i32
    %52 = tpu.dynamic_rotate %51 by %c1_i32_25 dim 0 : vector<96x4xf32>, i32 -> vector<96x4xf32>
    %cst_26 = arith.constant 0.000000e+00 : f32
    %53 = vector.broadcast %cst_26 : f32 to vector<96x4xf32>
    %54 = vector.shape_cast %48 : vector<96x1xi1> to vector<96x1xi1>
    %55 = vector.broadcast %54 : vector<96x1xi1> to vector<96x4xi1>
    %56 = arith.select %55, %52, %53 : vector<96x4xi1>, vector<96x4xf32>
    %c95_i32 = arith.constant 95 : i32
    %57 = tpu.dynamic_rotate %51 by %c95_i32 dim 0 : vector<96x4xf32>, i32 -> vector<96x4xf32>
    %cst_27 = arith.constant 0.000000e+00 : f32
    %58 = vector.broadcast %cst_27 : f32 to vector<96x4xf32>
    %59 = vector.shape_cast %50 : vector<96x1xi1> to vector<96x1xi1>
    %60 = vector.broadcast %59 : vector<96x1xi1> to vector<96x4xi1>
    %61 = arith.select %60, %57, %58 : vector<96x4xi1>, vector<96x4xf32>
    %62 = tpu.concatenate %56, %51, %61 in 1 : vector<96x4xf32>, vector<96x4xf32>, vector<96x4xf32> -> vector<96x12xf32>
    %c0_28 = arith.constant 0 : index
    %c0_29 = arith.constant 0 : index
    %63 = vector.load %arg7[%c0_28, %c0_29] : memref<12x8xf32, #tpu.memory_space<vmem>>, vector<12x8xf32>
    %cst_30 = arith.constant dense<0.000000e+00> : vector<96x8xf32>
    %64 = tpu.matmul %62, %63, %cst_30 {dimension_numbers = #tpu.dot_dimension_numbers<[1], [0], [0], [1], [0, 0, 1, 1], [], []>} : vector<96x12xf32>, vector<12x8xf32>, vector<96x8xf32> -> vector<96x8xf32>
    %c0_31 = arith.constant 0 : index
    %c0_32 = arith.constant 0 : index
    %65 = vector.load %arg8[%c0_31, %c0_32] : memref<1x8xf32, #tpu.memory_space<vmem>>, vector<1x8xf32>
    %66 = vector.broadcast %65 : vector<1x8xf32> to vector<96x8xf32>
    %67 = arith.addf %64, %66 : vector<96x8xf32>
    %cst_33 = arith.constant 0.000000e+00 : f32
    %68 = vector.broadcast %cst_33 : f32 to vector<96x8xf32>
    %69 = arith.maximumf %67, %68 : vector<96x8xf32>
    %c16_i32_34 = arith.constant 16 : i32
    %70 = vector.broadcast %c16_i32_34 : i32 to vector<96x1xi32>
    %71 = arith.cmpi slt, %30, %70 : vector<96x1xi32>
    %c80_i32 = arith.constant 80 : i32
    %72 = vector.broadcast %c80_i32 : i32 to vector<96x1xi32>
    %73 = arith.cmpi sge, %30, %72 : vector<96x1xi32>
    %cst_35 = arith.constant 1.000000e+00 : f32
    %74 = vector.broadcast %5 : f32 to vector<96x1xf32>
    %75 = vector.broadcast %cst_35 : f32 to vector<96x1xf32>
    %76 = arith.select %73, %74, %75 : vector<96x1xi1>, vector<96x1xf32>
    %77 = vector.broadcast %2 : f32 to vector<96x1xf32>
    %78 = arith.select %71, %77, %76 : vector<96x1xi1>, vector<96x1xf32>
    %79 = vector.broadcast %78 : vector<96x1xf32> to vector<96x8xf32>
    %80 = arith.mulf %69, %79 : vector<96x8xf32>
    %81 = vector.extract_strided_slice %80 {offsets = [0, 0], sizes = [96, 4], strides = [1, 1]} : vector<96x8xf32> to vector<96x4xf32>
    %82 = vector.extract_strided_slice %80 {offsets = [0, 4], sizes = [96, 4], strides = [1, 1]} : vector<96x8xf32> to vector<96x4xf32>
    %c1_i32_36 = arith.constant 1 : i32
    %83 = tpu.dynamic_rotate %82 by %c1_i32_36 dim 0 : vector<96x4xf32>, i32 -> vector<96x4xf32>
    %cst_37 = arith.constant 0.000000e+00 : f32
    %84 = vector.broadcast %cst_37 : f32 to vector<96x4xf32>
    %85 = vector.shape_cast %48 : vector<96x1xi1> to vector<96x1xi1>
    %86 = vector.broadcast %85 : vector<96x1xi1> to vector<96x4xi1>
    %87 = arith.select %86, %83, %84 : vector<96x4xi1>, vector<96x4xf32>
    %88 = tpu.concatenate %87, %81, %82 in 1 : vector<96x4xf32>, vector<96x4xf32>, vector<96x4xf32> -> vector<96x12xf32>
    %c95_i32_38 = arith.constant 95 : i32
    %89 = tpu.dynamic_rotate %81 by %c95_i32_38 dim 0 : vector<96x4xf32>, i32 -> vector<96x4xf32>
    %cst_39 = arith.constant 0.000000e+00 : f32
    %90 = vector.broadcast %cst_39 : f32 to vector<96x4xf32>
    %91 = vector.shape_cast %50 : vector<96x1xi1> to vector<96x1xi1>
    %92 = vector.broadcast %91 : vector<96x1xi1> to vector<96x4xi1>
    %93 = arith.select %92, %89, %90 : vector<96x4xi1>, vector<96x4xf32>
    %94 = tpu.concatenate %81, %82, %93 in 1 : vector<96x4xf32>, vector<96x4xf32>, vector<96x4xf32> -> vector<96x12xf32>
    %95 = vector.shape_cast %88 : vector<96x12xf32> to vector<1x96x12xf32>
    %96 = vector.shape_cast %94 : vector<96x12xf32> to vector<1x96x12xf32>
    %97 = tpu.concatenate %95, %96 in 0 : vector<1x96x12xf32>, vector<1x96x12xf32> -> vector<2x96x12xf32>
    %98 = vector.extract_strided_slice %97 {offsets = [0, 0, 0], sizes = [2, 64, 12], strides = [1, 1, 1]} : vector<2x96x12xf32> to vector<2x64x12xf32>
    %99 = vector.shape_cast %98 : vector<2x64x12xf32> to vector<128x12xf32>
    %c0_40 = arith.constant 0 : index
    %c0_41 = arith.constant 0 : index
    %c0_42 = arith.constant 0 : index
    %100 = vector.load %arg9[%c0_40, %c0_41, %c0_42] : memref<3x12x16xf32, #tpu.memory_space<vmem>>, vector<1x12x16xf32>
    %101 = vector.shape_cast %100 : vector<1x12x16xf32> to vector<12x16xf32>
    %cst_43 = arith.constant dense<0.000000e+00> : vector<128x16xf32>
    %102 = tpu.matmul %99, %101, %cst_43 {dimension_numbers = #tpu.dot_dimension_numbers<[1], [0], [0], [1], [0, 0, 1, 1], [], []>} : vector<128x12xf32>, vector<12x16xf32>, vector<128x16xf32> -> vector<128x16xf32>
    %103 = vector.extract_strided_slice %97 {offsets = [0, 16, 0], sizes = [2, 64, 12], strides = [1, 1, 1]} : vector<2x96x12xf32> to vector<2x64x12xf32>
    %104 = vector.shape_cast %103 : vector<2x64x12xf32> to vector<128x12xf32>
    %c1 = arith.constant 1 : index
    %c0_44 = arith.constant 0 : index
    %c0_45 = arith.constant 0 : index
    %105 = vector.load %arg9[%c1, %c0_44, %c0_45] : memref<3x12x16xf32, #tpu.memory_space<vmem>>, vector<1x12x16xf32>
    %106 = vector.shape_cast %105 : vector<1x12x16xf32> to vector<12x16xf32>
    %cst_46 = arith.constant dense<0.000000e+00> : vector<128x16xf32>
    %107 = tpu.matmul %104, %106, %cst_46 {dimension_numbers = #tpu.dot_dimension_numbers<[1], [0], [0], [1], [0, 0, 1, 1], [], []>} : vector<128x12xf32>, vector<12x16xf32>, vector<128x16xf32> -> vector<128x16xf32>
    %108 = arith.addf %102, %107 : vector<128x16xf32>
    %109 = vector.extract_strided_slice %97 {offsets = [0, 32, 0], sizes = [2, 64, 12], strides = [1, 1, 1]} : vector<2x96x12xf32> to vector<2x64x12xf32>
    %110 = vector.shape_cast %109 : vector<2x64x12xf32> to vector<128x12xf32>
    %c2 = arith.constant 2 : index
    %c0_47 = arith.constant 0 : index
    %c0_48 = arith.constant 0 : index
    %111 = vector.load %arg9[%c2, %c0_47, %c0_48] : memref<3x12x16xf32, #tpu.memory_space<vmem>>, vector<1x12x16xf32>
    %112 = vector.shape_cast %111 : vector<1x12x16xf32> to vector<12x16xf32>
    %cst_49 = arith.constant dense<0.000000e+00> : vector<128x16xf32>
    %113 = tpu.matmul %110, %112, %cst_49 {dimension_numbers = #tpu.dot_dimension_numbers<[1], [0], [0], [1], [0, 0, 1, 1], [], []>} : vector<128x12xf32>, vector<12x16xf32>, vector<128x16xf32> -> vector<128x16xf32>
    %114 = arith.addf %108, %113 : vector<128x16xf32>
    %c0_50 = arith.constant 0 : index
    %c0_51 = arith.constant 0 : index
    %115 = vector.load %arg10[%c0_50, %c0_51] : memref<1x16xf32, #tpu.memory_space<vmem>>, vector<1x16xf32>
    %116 = vector.broadcast %115 : vector<1x16xf32> to vector<128x16xf32>
    %117 = arith.addf %114, %116 : vector<128x16xf32>
    %cst_52 = arith.constant 0.000000e+00 : f32
    %118 = vector.broadcast %cst_52 : f32 to vector<128x16xf32>
    %119 = arith.maximumf %117, %118 : vector<128x16xf32>
    %120 = vector.shape_cast %119 : vector<128x16xf32> to vector<2x4x16x16xf32>
    %121 = vector.extract_strided_slice %120 {offsets = [0, 0, 0, 0], sizes = [1, 4, 16, 16], strides = [1, 1, 1, 1]} : vector<2x4x16x16xf32> to vector<1x4x16x16xf32>
    %122 = vector.shape_cast %121 : vector<1x4x16x16xf32> to vector<4x16x16xf32>
    %c0_53 = arith.constant 0 : index
    %c0_54 = arith.constant 0 : index
    %c0_55 = arith.constant 0 : index
    %c0_56 = arith.constant 0 : index
    %123 = vector.load %arg11[%c0_53, %c0_54, %c0_55, %c0_56] : memref<1x4x16x32xf32, #tpu.memory_space<vmem>>, vector<1x4x16x16xf32>
    %124 = vector.shape_cast %123 : vector<1x4x16x16xf32> to vector<4x16x16xf32>
    %125 = vector.shape_cast %122 : vector<4x16x16xf32> to vector<1x4x16x16xf32>
    tpu.vector_store %arg11[%c0_53, %c0_54, %c0_55, %c0_56], %125 {strides = array<i32>} : memref<1x4x16x32xf32, #tpu.memory_space<vmem>>, vector<1x4x16x16xf32>,
    %126 = vector.extract_strided_slice %120 {offsets = [1, 0, 0, 0], sizes = [1, 4, 16, 16], strides = [1, 1, 1, 1]} : vector<2x4x16x16xf32> to vector<1x4x16x16xf32>
    %127 = vector.shape_cast %126 : vector<1x4x16x16xf32> to vector<4x16x16xf32>
    %c0_57 = arith.constant 0 : index
    %c0_58 = arith.constant 0 : index
    %c0_59 = arith.constant 0 : index
    %c16 = arith.constant 16 : index
    %128 = vector.load %arg11[%c0_57, %c0_58, %c0_59, %c16] : memref<1x4x16x32xf32, #tpu.memory_space<vmem>>, vector<1x4x16x16xf32>
    %129 = vector.shape_cast %128 : vector<1x4x16x16xf32> to vector<4x16x16xf32>
    %130 = vector.shape_cast %127 : vector<4x16x16xf32> to vector<1x4x16x16xf32>
    tpu.vector_store %arg11[%c0_57, %c0_58, %c0_59, %c16], %130 {strides = array<i32>} : memref<1x4x16x32xf32, #tpu.memory_space<vmem>>, vector<1x4x16x16xf32>,
    return
  }
  func.func @transform_0(%arg0: i32, %arg1: i32) -> (i32, i32, i32, i32) {
    %c0_i32 = arith.constant 0 : i32
    %c0_i32_0 = arith.constant 0 : i32
    %c0_i32_1 = arith.constant 0 : i32
    return %arg0, %arg1, %c0_i32, %c0_i32_0 : i32, i32, i32, i32
  }
  func.func @transform_1(%arg0: i32, %arg1: i32) -> (i32, i32, i32, i32) {
    %c0_i32 = arith.constant 0 : i32
    %c0_i32_0 = arith.constant 0 : i32
    %c0_i32_1 = arith.constant 0 : i32
    return %arg0, %arg1, %c0_i32, %c0_i32_0 : i32, i32, i32, i32
  }
  func.func @transform_2(%arg0: i32, %arg1: i32) -> (i32, i32, i32, i32) {
    %c0_i32 = arith.constant 0 : i32
    %c0_i32_0 = arith.constant 0 : i32
    %c0_i32_1 = arith.constant 0 : i32
    return %arg0, %arg1, %c0_i32, %c0_i32_0 : i32, i32, i32, i32
  }
  func.func @transform_3(%arg0: i32, %arg1: i32) -> (i32, i32) {
    %c0_i32 = arith.constant 0 : i32
    %c0_i32_0 = arith.constant 0 : i32
    %c0_i32_1 = arith.constant 0 : i32
    return %c0_i32, %c0_i32_0 : i32, i32
  }
  func.func @transform_4(%arg0: i32, %arg1: i32) -> (i32, i32) {
    %c0_i32 = arith.constant 0 : i32
    %c0_i32_0 = arith.constant 0 : i32
    %c0_i32_1 = arith.constant 0 : i32
    return %c0_i32, %c0_i32_0 : i32, i32
  }
  func.func @transform_5(%arg0: i32, %arg1: i32) -> (i32, i32) {
    %c0_i32 = arith.constant 0 : i32
    %c0_i32_0 = arith.constant 0 : i32
    %c0_i32_1 = arith.constant 0 : i32
    return %c0_i32, %c0_i32_0 : i32, i32
  }
  func.func @transform_6(%arg0: i32, %arg1: i32) -> (i32, i32) {
    %c0_i32 = arith.constant 0 : i32
    %c0_i32_0 = arith.constant 0 : i32
    %c0_i32_1 = arith.constant 0 : i32
    return %c0_i32, %c0_i32_0 : i32, i32
  }
  func.func @transform_7(%arg0: i32, %arg1: i32) -> (i32, i32, i32) {
    %c0_i32 = arith.constant 0 : i32
    %c0_i32_0 = arith.constant 0 : i32
    %c0_i32_1 = arith.constant 0 : i32
    %c0_i32_2 = arith.constant 0 : i32
    return %c0_i32, %c0_i32_0, %c0_i32_1 : i32, i32, i32
  }
  func.func @transform_8(%arg0: i32, %arg1: i32) -> (i32, i32) {
    %c0_i32 = arith.constant 0 : i32
    %c0_i32_0 = arith.constant 0 : i32
    %c0_i32_1 = arith.constant 0 : i32
    return %c0_i32, %c0_i32_0 : i32, i32
  }
  func.func @transform_9(%arg0: i32, %arg1: i32) -> (i32, i32, i32, i32) {
    %c0_i32 = arith.constant 0 : i32
    %c0_i32_0 = arith.constant 0 : i32
    %c0_i32_1 = arith.constant 0 : i32
    return %arg0, %arg1, %c0_i32, %c0_i32_0 : i32, i32, i32, i32
  }
}

</mosaic_0001>

<bundles_post_ra>
// kernel: tpu_custom_call.1
= control target key start
LH: loop header
LB: loop body
LE: loop exit
PB: predicated region body
PF: predicated region fallthrough
CT: control target
= control target key end

     0   :  { %s4766_s0 = inlined_call_operand.hbm [shape: f32[2,4,16,8], index: 0, kind: input, shape index: {}]   ;;  %s4767_s1 = inlined_call_operand.hbm [shape: f32[2,16,16,8], index: 1, kind: input, shape index: {}]   ;;  %s4768_s2 = inlined_call_operand.hbm [shape: f32[2,4,16,8], index: 2, kind: input, shape index: {}]   ;;  %s4769_s3 = inlined_call_operand.hbm [shape: f32[8,4], index: 3, kind: input, shape index: {}]   ;;  %s4770_s4 = inlined_call_operand.hbm [shape: f32[1,4], index: 4, kind: input, shape index: {}]   ;;  %s4771_s5 = inlined_call_operand.hbm [shape: f32[12,8], index: 5, kind: input, shape index: {}]   ;;  %s4772_s6 = inlined_call_operand.hbm [shape: f32[1,8], index: 6, kind: input, shape index: {}]   ;;  %s4773_s7 = inlined_call_operand.hbm [shape: f32[3,12,16], index: 7, kind: input, shape index: {}]   ;;  %s4774_s8 = inlined_call_operand.hbm [shape: f32[1,16], index: 8, kind: input, shape index: {}]   ;;  %s4775_s9 = inlined_call_operand.hbm [shape: f32[2,16,16,32], index: 9, kind: output, shape index: {}]  }
   0x1   :  { %4809 = sst [smem:[#allocation35_spill]] %s4767_s1 }
   0x2   :  { %4810 = sst [smem:[#allocation36_spill]] %s4769_s3 }
   0x3   :  { %4811 = sst [smem:[#allocation37_spill]] %s4771_s5 }
   0x4   :  { %4812 = sst [smem:[#allocation38_spill]] %s4773_s7 }
   0x5   :  { %4813 = sst [smem:[#allocation39_spill]] %s4775_s9 }
   0x6   :  { %14 = vsyncpa [#allocation3], 0 }
   0x7   :  { %16 = vsyncpa [#allocation3 + $0x1], 0 }
   0x8   :  { %17 = vsyncpa [#allocation6], 0 }
   0x9   :  { %19 = vsyncpa [#allocation6 + $0x1], 0 }
   0xa   :  { %20 = vsyncpa [#allocation9], 0 }
   0xb   :  { %21 = vsyncpa [#allocation12], 0 }
   0xc   :  { %22 = vsyncpa [#allocation15], 0 }
   0xd   :  { %23 = vsyncpa [#allocation4], 0 }
   0xe   :  { %25 = vsyncpa [#allocation4 + $0x1], 0  ;;  %s3613_s30 = smov 0   ;;  %s3615_s10 = smov 0  }
   0xf   :  { %s3617_s11 = smov 0   ;;  %s3619_s12 = smov 0  }
  0x10   :  { %s3621_s13 = smov 0   ;;  %s3623_s14 = smov 0  }
  0x11   :  { %s3625_s15 = smov 0   ;;  %s3627_s16 = smov 0  }
  0x12 LB: > { %4814 = sst [smem:[#allocation24_spill]] %s3515_s30  ;;  %s3654_s17 = sadd.s32 4294967295, %s3543_s16   ;;  %s3543_s16 = sphi %s3627_s16, %s31_s16   ;;  %s3539_s15 = sphi %s3625_s15, %s4988_s15   ;;  %s3535_s14 = sphi %s3623_s14, %s4987_s14   ;;  %s3531_s13 = sphi %s3621_s13, %s4986_s13   ;;  %s3527_s12 = sphi %s3619_s12, %s4985_s12   ;;  %s3523_s11 = sphi %s3617_s11, %s4980_s11   ;;  %s3519_s10 = sphi %s3615_s10, %s4984_s10   ;;  %s3515_s30 = sphi %s3613_s30, %s4983_s30  }
  0x13   : > { %4815 = sst [smem:[#allocation25_spill]] %s3523_s11  ;;  %p2623_p0 = scmp.ge.s32.totalorder %s3543_s16, 1 }
  0x14   : > { %4816 = sst [smem:[#allocation26_spill]] %s3527_s12  ;;  %p4777_p1 = scmp.eq.s32.totalorder %s3654_s17, 0 }
  0x15   : > { %4817 = sst [smem:[#allocation27_spill]] %s3531_s13  ;;  %p286_p2 = scmp.lt.s32.totalorder %s3543_s16, 9 }
  0x16   : > { %4818 = sst [smem:[#allocation28_spill]] %s3543_s16  ;;  %s3545_s19 = smov [#allocation8]  }
  0x17   : > { %4819 = sst [smem:[#allocation29_spill]] %s3654_s17  ;;  %p3659_p3 = pnand %p2623_p0, %p286_p2 }
  0x18   : > { %s299_s20 = sshll.u32 %s3545_s19, 4  ;;  %s3546_s21 = smov [#allocation11]   ;;  %s300_s20 = int_to_ptr.vmem [resolvable:$true] %s299_s20 }
  0x19   : > { %s4820_s18 = scalar_select %p3659_p3, 1, 0 }
  0x1a   : > { %p3046_p4 = pneg %p3659_p3  ;;  %s320_s22 = sshll.u32 %s3546_s21, 4  ;;  %s3671_s22 = int_to_ptr.vmem [resolvable:$true] %s320_s22 }
  0x1b   : > { %s3547_s24 = smov [#allocation14]   ;;  %s4822_s3 = sld [smem:[#allocation36_spill]] }
  0x1c   : > { %p3667_p5 = pnand %p3046_p4, %p4777_p1  ;;  %s3673_s25 = sshll.u32 %s3547_s24, 4  ;;  %s345_s25 = int_to_ptr.vmem [resolvable:$true] %s3673_s25 }
  0x1e   : > { %s4821_s23 = scalar_select %p3667_p5, 1, 0 }
  0x1f   : > { %p3683_p7 = pneg %p3667_p5 }
  0x21   : > { %s3171_s28 = scalar_lea.hbm %s4822_s3, 128 }
  0x22   : > { %p3172_p6 = scmp.ne.s32.totalorder %s4822_s3, %s3171_s28  ;;  %p3178_p10 = scmp.lt.u32.totalorder %s3171_s28, %s4822_s3 }
  0x23   : > { %s4823_s21 = scalar_select %p3683_p7, 1, 0 }
  0x24   : > { %p3174_p8 = pnand %p3683_p7, %p3172_p6 }
  0x26   : > { %p3175_p9 = pneg %p3174_p8 }
  0x28   : > { %p3180_p11 = pnand %p3178_p10, %p3175_p9 }
  0x2a   : > { %3183 = shalt.err (!%p3180_p11)
}
  0x2b   : > { %s3184_s26 = scalar_lea.vmem %s300_s20, 128  ;;  %p3192_p2 = scmp.lt.s32.totalorder %s300_s20, %s300_s20 }
  0x2c   : > { %p3185_p12 = scmp.ne.s32.totalorder %s300_s20, %s3184_s26  ;;  %p3193_p4 = scmp.lt.s32.totalorder %s3184_s26, %s3184_s26 }
  0x2e   : > { %p3187_p13 = pnand %p3185_p12, %p3683_p7  ;;  %p3194_p1 = por %p3193_p4, %p3192_p2 }
  0x30   : > { %p3188_p0 = pneg %p3187_p13 }
  0x32   : > { %p3195_p3 = pnand %p3194_p1, %p3188_p0 }
  0x34   : > { %3198 = shalt.err (!%p3195_p3)
}
  0x35   : > { %3049 = dma.hbm_to_vmem [thread:$0]  (!%p3667_p5), %s4822_s3, 128, %s300_s20, [#allocation9]  }
  0x36   : > { %s4824_s5 = sld [smem:[#allocation37_spill]] }
  0x3c   : > { %s3199_s19 = scalar_lea.hbm %s4824_s5, 256 }
  0x3d   : > { %p3200_p6 = scmp.ne.s32.totalorder %s4824_s5, %s3199_s19  ;;  %p3206_p1 = scmp.lt.u32.totalorder %s3199_s19, %s4824_s5 }
  0x3f   : > { %p3202_p8 = pnand %p3200_p6, %p3683_p7 }
  0x41   : > { %p3203_p9 = pneg %p3202_p8 }
  0x43   : > { %p3208_p3 = pnand %p3206_p1, %p3203_p9 }
  0x45   : > { %3211 = shalt.err (!%p3208_p3)
}
  0x46   : > { %s3212_s20 = scalar_lea.vmem %s3671_s22, 256  ;;  %p3220_p13 = scmp.lt.s32.totalorder %s3671_s22, %s3671_s22 }
  0x47   : > { %p3213_p10 = scmp.ne.s32.totalorder %s3671_s22, %s3212_s20  ;;  %p3221_p0 = scmp.lt.s32.totalorder %s3212_s20, %s3212_s20 }
  0x49   : > { %p3215_p11 = pnand %p3213_p10, %p3683_p7  ;;  %p3222_p2 = por %p3221_p0, %p3220_p13 }
  0x4b   : > { %p3216_p12 = pneg %p3215_p11 }
  0x4d   : > { %p3223_p4 = pnand %p3222_p2, %p3216_p12 }
  0x4f   : > { %3226 = shalt.err (!%p3223_p4)
}
  0x50   : > { %s4780_s13 = smov 128   ;;  %s4782_s12 = smov 8  }
  0x51   : > { %3055 = dma.hbm_to_vmem [thread:$0]  (!%p3667_p5), %s4824_s5, 256, %s3671_s22, [#allocation12], %s4780_s13, %s4780_s13, %s4782_s12  }
  0x52   : > { %s4825_s7 = sld [smem:[#allocation38_spill]] }
  0x58   : > { %s3227_s19 = scalar_lea.hbm %s4825_s7, 768 }
  0x59   : > { %p3228_p6 = scmp.ne.s32.totalorder %s4825_s7, %s3227_s19  ;;  %p3234_p1 = scmp.lt.u32.totalorder %s3227_s19, %s4825_s7 }
  0x5b   : > { %p3230_p8 = pnand %p3228_p6, %p3683_p7 }
  0x5d   : > { %p3231_p9 = pneg %p3230_p8 }
  0x5f   : > { %p3236_p3 = pnand %p3234_p1, %p3231_p9 }
  0x61   : > { %3239 = shalt.err (!%p3236_p3)
}
  0x62   : > { %s3240_s27 = scalar_lea.vmem %s345_s25, 768  ;;  %p3248_p13 = scmp.lt.s32.totalorder %s345_s25, %s345_s25 }
  0x63   : > { %p3241_p10 = scmp.ne.s32.totalorder %s345_s25, %s3240_s27  ;;  %p3249_p0 = scmp.lt.s32.totalorder %s3240_s27, %s3240_s27 }
  0x65   : > { %p3243_p11 = pnand %p3241_p10, %p3683_p7  ;;  %p3250_p2 = por %p3249_p0, %p3248_p13 }
  0x67   : > { %p3244_p12 = pneg %p3243_p11 }
  0x69   : > { %p3251_p4 = pnand %p3250_p2, %p3244_p12 }
  0x6b   : > { %3254 = shalt.err (!%p3251_p4)
}
  0x6c   : > { %3061 = dma.hbm_to_vmem [thread:$0]  (!%p3667_p5), %s4825_s7, 768, %s345_s25, [#allocation15], %s4780_s13, %s4780_s13, %s4782_s12  }
  0x6d   : > { %s2622_s29 = sadd.s32 4294967294, %s3543_s16   ;;  %s40_s9 = sadd.s32 1, %s3535_s14 }
  0x6e   : > { %s43_s28 = sadd.s32 1, %s3539_s15  ;;  %p41_p6 = scmp.ge.s32.totalorder %s40_s9, 4 }
  0x6f   : > { %s52_s19 = sadd.s32 1, %s3523_s11  ;;  %p59_p8 = scmp.ne.s32.totalorder %s3523_s11, %s3519_s10 }
  0x70   : > { %p60_p9 = scmp.eq.s32.totalorder %s3543_s16, 0  ;;  %s4990_s9 = smov (%p41_p6, %s40_s9), 0 }
  0x71   : > { %4826 = sst [smem:[#allocation30_spill]] %s4990_s9  ;;  %s4992_s28 = smov (!%p41_p6, %s43_s28), %s3539_s15 }
  0x72   : > { %s48_s24 = ssub.s32 %s3535_s14, %s4990_s9  ;;  %p3759_p1 = por %p60_p9, %p59_p8 }
  0x73   : > { %p45_p3 = scmp.ge.s32.totalorder %s4992_s28, 2  ;;  %p65_p10 = scmp.ne.s32.totalorder %s3519_s10, %s3515_s30 }
  0x74   : > { %p273_p11 = scmp.eq.s32.totalorder %s3654_s17, 7  ;;  %p279_p12 = scmp.eq.s32.totalorder %s2622_s29, 7 }
  0x75   : > { %s4994_s28 = smov (%p45_p3, %s4992_s28), 0  ;;  %p4829_p13 = scmp.eq.s32.totalorder %s3654_s17, 0 }
  0x76   : > { %4828 = sst [smem:[#allocation31_spill]] %s4994_s28  ;;  %p3774_p2 = por %p273_p11, %p59_p8 }
  0x77   : > { %p3770_p0 = por %p4829_p13, %p65_p10  ;;  %s47_s27 = ssub.s32 %s3539_s15, %s4994_s28 }
  0x78   : > { %s4831_s20 = scalar_select %p3774_p2, 1, 0 }
  0x79   : > { %s4830_s25 = scalar_select %p3770_p0, 1, 0 }
  0x7a   : > { %4832 = sst [smem:[#allocation32_spill]] %s4831_s20  ;;  %p3780_p4 = por %p279_p12, %p65_p10 }
  0x7b   : > { %s49_s22 = sor.u32 %s48_s24, %s47_s27  ;;  %p3085_p6 = scmp.lt.s32.totalorder %s3543_s16, 8 }
  0x7c   : > { %s4833_s3 = scalar_select %p3780_p4, 1, 0 }
  0x7d   : > { %p50_p9 = scmp.eq.s32.totalorder %s49_s22, 0  ;;  %s3786_s29 = sand.u32 1, %s3523_s11  }
  0x7e   : > { %4834 = sst [smem:[#allocation33_spill]] %s4833_s3  ;;  %p3790_p3 = pnand %p3085_p6, %p3759_p1 }
  0x7f   : > { %s392_s12 = sand.u32 1, %s3543_s16   ;;  %s2635_s7 = sshll.u32 %s3786_s29, 6 }
  0x80   : > { %s4835_s13 = scalar_select %p3790_p3, 1, 0 }
  0x81   : > { %s3796_s5 = scalar_select %p50_p9, %s3523_s11, %s52_s19  }
  0x82   : > { %s2741_s28 = sshll.u32 %s3535_s14, 3  ;;  %s2638_s9 = sshll.u32 %s3539_s15, 5 }
  0x83   : > { %4836 = sst [smem:[#allocation34_spill]] %s3796_s5  ;;  %s403_s30 = sadd.s32 %s2741_s28, %s2638_s9 }
  0x84   : > { %s396_s3 = scalar_lea.vmem [#allocation5], %s2635_s7  ;;  %s2639_s27 = sshll.u32 %s403_s30, 7 }
  0x85   : > { %s406_s24 = sshll.u32 %s396_s3, 4  ;;  %s4837_s1 = sld [smem:[#allocation35_spill]]  ;;  %s3801_s24 = int_to_ptr.vmem [resolvable:$true] %s406_s24 }
  0x86   : > { %s3808_s19 = scalar_lea.sflag [#allocation6], %s392_s12  ;;  %p3814_p1 = pneg %p3790_p3 }
  0x88   : > { %s4838_s7 = scalar_select %p3814_p1, 1, 0 }
  0x8b   : > { %s3806_s20 = scalar_lea.hbm %s4837_s1, %s2639_s27  ;;  %s3260_s28 = scalar_lea.hbm %s4837_s1, 8192 }
  0x8c   : > { %s3255_s5 = scalar_lea.hbm %s3806_s20, 1024  ;;  %p3261_p12 = scmp.lt.u32.totalorder %s3806_s20, %s4837_s1 }
  0x8d   : > { %p3256_p8 = scmp.ne.s32.totalorder %s3806_s20, %s3255_s5  ;;  %p3262_p13 = scmp.lt.u32.totalorder %s3260_s28, %s3255_s5 }
  0x8e   : > { %p3264_p9 = scmp.lt.u32.totalorder %s3255_s5, %s3806_s20 }
  0x8f   : > { %p3258_p10 = pnand %p3814_p1, %p3256_p8  ;;  %p3263_p6 = por %p3262_p13, %p3261_p12 }
  0x91   : > { %p3259_p11 = pneg %p3258_p10  ;;  %p3265_p4 = por %p3264_p9, %p3263_p6 }
  0x93   : > { %p3266_p2 = pnand %p3265_p4, %p3259_p11 }
  0x95   : > { %3269 = shalt.err (!%p3266_p2)
}
  0x96   : > { %s3270_s12 = scalar_lea.vmem %s3801_s24, 1024  ;;  %s3550_s22 = smov [#allocation5]  }
  0x97   : > { %p3271_p8 = scmp.ne.s32.totalorder %s3801_s24, %s3270_s12  ;;  %s3275_s26 = sshll.u32 %s3550_s22, 4  ;;  %s3276_s26 = int_to_ptr.vmem [resolvable:$false] %s3275_s26 }
  0x98   : > { %s3277_s30 = scalar_lea.vmem %s3276_s26, 2048  ;;  %p3278_p5 = scmp.lt.s32.totalorder %s3801_s24, %s3276_s26 }
  0x99   : > { %p3273_p10 = pnand %p3271_p8, %p3814_p1  ;;  %p3279_p7 = scmp.lt.s32.totalorder %s3277_s30, %s3270_s12 }
  0x9b   : > { %p3274_p0 = pneg %p3273_p10  ;;  %p3280_p12 = por %p3279_p7, %p3278_p5 }
  0x9d   : > { %p3281_p13 = pnand %p3280_p12, %p3274_p0 }
  0x9f   : > { %3284 = shalt.err (!%p3281_p13)
}
  0xa0   : > { %s4839_s5 = smov 8   ;;  %s4840_s9 = smov 128  }
  0xa1   : > { %3071 = dma.hbm_to_vmem [thread:$0]  (!%p3790_p3), %s3806_s20, 1024, %s3801_s24, %s3808_s19, %s4840_s9, %s4840_s9, %s4839_s5  }
  0xa2   : > { %s3551_s28 = smov [#allocation10]   ;;  %s3552_s27 = smov [#allocation13]  }
  0xa3   : > { %s310_s3 = sshll.u32 %s3551_s28, 4  ;;  %s334_s22 = sshll.u32 %s3552_s27, 4  ;;  %s311_s3 = int_to_ptr.vmem [resolvable:$true] %s310_s3  ;;  %s335_s22 = int_to_ptr.vmem [resolvable:$true] %s334_s22 }
  0xa4   : > { %s3285_s30 = scalar_lea.hbm %s4770_s4, 16  ;;  %p4841_p7 = scmp.ne.s32.totalorder %s4823_s21, 0 }
  0xa5   : > { %p3286_p5 = scmp.ne.s32.totalorder %s4770_s4, %s3285_s30  ;;  %p3292_p4 = scmp.lt.u32.totalorder %s3285_s30, %s4770_s4 }
  0xa7   : > { %p3288_p0 = pnand %p3286_p5, %p4841_p7 }
  0xa9   : > { %p3289_p2 = pneg %p3288_p0 }
  0xab   : > { %p3294_p11 = pnand %p3292_p4, %p3289_p2 }
  0xad   : > { %3297 = shalt.err (!%p3294_p11)
}
  0xae   : > { %s3298_s20 = scalar_lea.vmem %s311_s3, 16  ;;  %s3305_s24 = scalar_lea.vmem %s311_s3, 32 }
  0xaf   : > { %p3299_p6 = scmp.ne.s32.totalorder %s311_s3, %s3298_s20  ;;  %p3306_p10 = scmp.lt.s32.totalorder %s311_s3, %s311_s3 }
  0xb0   : > { %p3307_p12 = scmp.lt.s32.totalorder %s3305_s24, %s3298_s20 }
  0xb1   : > { %p3301_p9 = pnand %p3299_p6, %p4841_p7 }
  0xb2   : > { %p3308_p13 = por %p3307_p12, %p3306_p10 }
  0xb3   : > { %p3302_p8 = pneg %p3301_p9 }
  0xb5   : > { %p3309_p3 = pnand %p3308_p13, %p3302_p8 }
  0xb7   : > { %3312 = shalt.err (!%p3309_p3)
}
  0xb8   : > { %p4842_p5 = scmp.ne.s32.totalorder %s4821_s23, 0  ;;  %s3313_s28 = scalar_lea.hbm %s4772_s6, 16 }
  0xb9   : > { %p3314_p0 = scmp.ne.s32.totalorder %s4772_s6, %s3313_s28  ;;  %p3320_p3 = scmp.lt.u32.totalorder %s3313_s28, %s4772_s6 }
  0xba   : > { %3052 = dma.hbm_to_vmem [thread:$0]  (!%p4842_p5), %s4770_s4, 16, %s311_s3, [#allocation9]  }
  0xbb   : > { %p3316_p2 = pnand %p3314_p0, %p4841_p7 }
  0xbd   : > { %p3317_p4 = pneg %p3316_p2 }
  0xbf   : > { %p3322_p11 = pnand %p3320_p3, %p3317_p4 }
  0xc1   : > { %3325 = shalt.err (!%p3322_p11)
}
  0xc2   : > { %s3326_s20 = scalar_lea.vmem %s335_s22, 16  ;;  %s3333_s3 = scalar_lea.vmem %s335_s22, 32 }
  0xc3   : > { %p3327_p6 = scmp.ne.s32.totalorder %s335_s22, %s3326_s20  ;;  %p3334_p10 = scmp.lt.s32.totalorder %s335_s22, %s335_s22 }
  0xc4   : > { %p3335_p12 = scmp.lt.s32.totalorder %s3333_s3, %s3326_s20 }
  0xc5   : > { %p3329_p9 = pnand %p3327_p6, %p4841_p7 }
  0xc6   : > { %p3336_p13 = por %p3335_p12, %p3334_p10 }
  0xc7   : > { %p3330_p8 = pneg %p3329_p9 }
  0xc9   : > { %p3337_p1 = pnand %p3336_p13, %p3330_p8 }
  0xcb   : > { %3340 = shalt.err (!%p3337_p1)
}
  0xcc   : > { %3058 = dma.hbm_to_vmem [thread:$0]  (!%p4842_p5), %s4772_s6, 16, %s335_s22, [#allocation12]  }
  0xcd   : > { %s3553_s11 = smov [#allocation16]   ;;  %s2631_s17 = sshll.u32 %s3786_s29, 4 }
  0xce   : > { %s358_s16 = sshll.u32 %s3553_s11, 4  ;;  %s3341_s26 = scalar_lea.hbm %s4774_s8, 16  ;;  %s359_s16 = int_to_ptr.vmem [resolvable:$true] %s358_s16 }
  0xcf   : > { %p3342_p1 = scmp.ne.s32.totalorder %s4774_s8, %s3341_s26  ;;  %p3348_p4 = scmp.lt.u32.totalorder %s3341_s26, %s4774_s8 }
  0xd1   : > { %p3344_p0 = pnand %p3342_p1, %p4841_p7 }
  0xd3   : > { %p3345_p2 = pneg %p3344_p0 }
  0xd5   : > { %p3350_p3 = pnand %p3348_p4, %p3345_p2 }
  0xd7   : > { %3353 = shalt.err (!%p3350_p3)
}
  0xd8   : > { %s3354_s22 = scalar_lea.vmem %s359_s16, 16  ;;  %s3361_s24 = scalar_lea.vmem %s359_s16, 32 }
  0xd9   : > { %p3355_p11 = scmp.ne.s32.totalorder %s359_s16, %s3354_s22  ;;  %p3362_p8 = scmp.lt.s32.totalorder %s359_s16, %s359_s16 }
  0xda   : > { %p3363_p10 = scmp.lt.s32.totalorder %s3361_s24, %s3354_s22 }
  0xdb   : > { %p3357_p6 = pnand %p3355_p11, %p4841_p7 }
  0xdc   : > { %p3364_p12 = por %p3363_p10, %p3362_p8 }
  0xdd   : > { %p3358_p9 = pneg %p3357_p6 }
  0xdf   : > { %p3365_p13 = pnand %p3364_p12, %p3358_p9 }
  0xe1   : > { %3368 = shalt.err (!%p3365_p13)
}
  0xe2   : > { %3064 = dma.hbm_to_vmem [thread:$0]  (!%p4842_p5), %s4774_s8, 16, %s359_s16, [#allocation15]  }
  0xe3   : > { %s2632_s21 = sshll.u32 %s3535_s14, 1  ;;  %s2633_s28 = sshll.u32 %s3539_s15, 3 }
  0xe4   : > { %s373_s27 = scalar_lea.vmem [#allocation2], %s2631_s17  ;;  %s379_s12 = sadd.s32 %s2633_s28, %s2632_s21 }
  0xe5   : > { %s382_s26 = sshll.u32 %s373_s27, 4  ;;  %s2634_s30 = sshll.u32 %s379_s12, 7  ;;  %s3900_s26 = int_to_ptr.vmem [resolvable:$true] %s382_s26 }
  0xe6   : > { %s3905_s3 = scalar_lea.hbm %s4766_s0, %s2634_s30  ;;  %s3910_s16 = scalar_lea.hbm %s4768_s2, %s2634_s30 }
  0xe7   : > { %s370_s1 = scalar_lea.sflag [#allocation3], %s3786_s29  ;;  %s3369_s11 = scalar_lea.hbm %s3905_s3, 256 }
  0xe8   : > { %p3370_p7 = scmp.ne.s32.totalorder %s3905_s3, %s3369_s11  ;;  %p4843_p5 = scmp.ne.s32.totalorder %s4838_s7, 0 }
  0xe9   : > { %s3374_s27 = scalar_lea.hbm %s4766_s0, 2048  ;;  %p3375_p2 = scmp.lt.u32.totalorder %s3905_s3, %s4766_s0 }
  0xea   : > { %p3372_p1 = pnand %p3370_p7, %p4843_p5  ;;  %p3376_p4 = scmp.lt.u32.totalorder %s3374_s27, %s3369_s11 }
  0xeb   : > { %p3378_p11 = scmp.lt.u32.totalorder %s3369_s11, %s3905_s3 }
  0xec   : > { %p3373_p0 = pneg %p3372_p1  ;;  %p3377_p3 = por %p3376_p4, %p3375_p2 }
  0xee   : > { %p3379_p6 = por %p3378_p11, %p3377_p3 }
  0xf0   : > { %p3380_p9 = pnand %p3379_p6, %p3373_p0 }
  0xf2   : > { %3383 = shalt.err (!%p3380_p9)
}
  0xf3   : > { %s3384_s30 = scalar_lea.vmem %s3900_s26, 256  ;;  %s3554_s23 = smov [#allocation2]  }
  0xf4   : > { %p3385_p8 = scmp.ne.s32.totalorder %s3900_s26, %s3384_s30  ;;  %s3389_s22 = sshll.u32 %s3554_s23, 4  ;;  %s3390_s22 = int_to_ptr.vmem [resolvable:$false] %s3389_s22 }
  0xf5   : > { %s3391_s24 = scalar_lea.vmem %s3390_s22, 512  ;;  %p3392_p13 = scmp.lt.s32.totalorder %s3900_s26, %s3390_s22 }
  0xf6   : > { %p3387_p10 = pnand %p3385_p8, %p4843_p5  ;;  %p3393_p7 = scmp.lt.s32.totalorder %s3391_s24, %s3384_s30 }
  0xf8   : > { %p3388_p12 = pneg %p3387_p10  ;;  %p3394_p1 = por %p3393_p7, %p3392_p13 }
  0xfa   : > { %p3395_p2 = pnand %p3394_p1, %p3388_p12 }
  0xfc   : > { %3398 = shalt.err (!%p3395_p2)
}
  0xfd   : > { %p4844_p0 = scmp.ne.s32.totalorder %s4835_s13, 0  ;;  %s420_s11 = scalar_lea.vmem [#allocation7], %s2631_s17 }
  0xfe   : > { %s429_s21 = sshll.u32 %s420_s11, 4  ;;  %s3399_s28 = scalar_lea.hbm %s3910_s16, 256  ;;  %s3941_s21 = int_to_ptr.vmem [resolvable:$true] %s429_s21 }
  0xff   : > { %3068 = dma.hbm_to_vmem [thread:$0]  (!%p4844_p0), %s3905_s3, 256, %s3900_s26, %s370_s1, %s4840_s9, %s4840_s9, %s4839_s5  }
 0x100   : > { %p3400_p4 = scmp.ne.s32.totalorder %s3910_s16, %s3399_s28  ;;  %s3404_s20 = scalar_lea.hbm %s4768_s2, 2048 }
 0x101   : > { %p3405_p6 = scmp.lt.u32.totalorder %s3910_s16, %s4768_s2  ;;  %p3406_p9 = scmp.lt.u32.totalorder %s3404_s20, %s3399_s28 }
 0x102   : > { %p3402_p3 = pnand %p3400_p4, %p4843_p5  ;;  %p3408_p10 = scmp.lt.u32.totalorder %s3399_s28, %s3910_s16 }
 0x103   : > { %p3407_p8 = por %p3406_p9, %p3405_p6 }
 0x104   : > { %p3403_p11 = pneg %p3402_p3 }
 0x105   : > { %p3409_p12 = por %p3408_p10, %p3407_p8 }
 0x107   : > { %p3410_p13 = pnand %p3409_p12, %p3403_p11 }
 0x109   : > { %3413 = shalt.err (!%p3410_p13)
}
 0x10a   : > { %s3414_s29 = scalar_lea.vmem %s3941_s21, 256  ;;  %s3555_s17 = smov [#allocation7]  }
 0x10b   : > { %p3415_p7 = scmp.ne.s32.totalorder %s3941_s21, %s3414_s29  ;;  %s3419_s26 = sshll.u32 %s3555_s17, 4  ;;  %s3420_s26 = int_to_ptr.vmem [resolvable:$false] %s3419_s26 }
 0x10c   : > { %s3421_s3 = scalar_lea.vmem %s3420_s26, 512  ;;  %p3422_p4 = scmp.lt.s32.totalorder %s3941_s21, %s3420_s26 }
 0x10d   : > { %p3417_p1 = pnand %p3415_p7, %p4843_p5  ;;  %p3423_p3 = scmp.lt.s32.totalorder %s3421_s3, %s3414_s29 }
 0x10f   : > { %p3418_p2 = pneg %p3417_p1  ;;  %p3424_p6 = por %p3423_p3, %p3422_p4 }
 0x111   : > { %p3425_p9 = pnand %p3424_p6, %p3418_p2 }
 0x113   : > { %3428 = shalt.err (!%p3425_p9)
}
 0x114   : > { %3074 = dma.hbm_to_vmem [thread:$0]  (!%p4844_p0), %s3910_s16, 256, %s3941_s21, %s3808_s19, %s4840_s9, %s4840_s9, %s4839_s5  }
 0x115   : > { %p4845_p5 = scmp.ne.s32.totalorder %s4820_s18, 0 }
 0x116   : > { %s3971_s7 = sand.u32 (!%p4845_p5), 1, %s3519_s10   ;;  %p4846_p11 = scmp.ne.s32.totalorder (!%p4845_p5), %s4830_s25, 0 }
 0x117   : > { %441 = sbr.rel (%p4845_p5) target bundleno = 1435 (0x59b), region = 56  ;;  %s2645_s1 = sshll.u32 (!%p4845_p5), %s3971_s7, 4 }
 0x118   : > { %s444_s22 = scalar_lea.sflag (!%p4845_p5), [#allocation3], %s3971_s7  ;;  %s447_s24 = scalar_lea.vmem (!%p4845_p5), [#allocation2], %s2645_s1 }
 0x11e   : > { %3490 = dma.done.wait (%p4846_p11), %s444_s22, 256  }
 0x11f   : > { %3492 = vsyncadd (%p4846_p11), %s444_s22, 4294967040  ;;  %s4847_s13 = sld [smem:[#allocation29_spill]]  ;;  %s2646_s19 = sshll.u32 %s3971_s7, 6 }
 0x120   : > { %s3983_s9 = scalar_lea.vmem [#allocation5], %s2646_s19 }
 0x125   : > { %s452_s18 = sand.u32 1, %s4847_s13  }
 0x126   : > { %s453_s5 = scalar_lea.sflag [#allocation6], %s452_s18 }
 0x127   : > { %3494 = dma.done.wait (%p4846_p11), %s453_s5, 1280  }
 0x128   : > { %3496 = vsyncadd (%p4846_p11), %s453_s5, 4294966016  ;;  %s3989_s16 = scalar_lea.vmem [#allocation7], %s2645_s1  ;;  %p4848_p0 = scmp.eq.s32.totalorder %s4847_s13, 0 }
 0x12a   : > { %3498 = dma.done.wait (%p4848_p0), [#allocation9], 144   ;;  %p4849_p8 = pmov %p4848_p0 }
 0x12b   : > { %p4850_p10 = pmov %p4848_p0 }
 0x12c   : > { %3500 = vsyncadd (%p4849_p8), [#allocation9], 4294967152 }
 0x12d   : > { %3502 = dma.done.wait (%p4850_p10), [#allocation12], 272   ;;  %p4851_p12 = pmov %p4848_p0 }
 0x12e   : > { %p4852_p13 = pmov %p4848_p0 }
 0x12f   : > { %3504 = vsyncadd (%p4851_p12), [#allocation12], 4294967024 }
 0x130   : > { %3506 = dma.done.wait (%p4852_p13), [#allocation15], 784   ;;  %p4853_p7 = pmov %p4848_p0 }
 0x131   : > { %vm4808_vm0 = vcmask 64512   ;;  %v542_v0 = vld [vmem:[#allocation8] sm:$0xff]  ;;  %v545_v3 = vld [vmem:[%s447_s24 + $0x8] sm:$0xff]  ;;  %v642_v6 = vld [vmem:[%s3983_s9 + $0x30] sm:$0xff]  ;;  %v866_v13 = vlaneseq  ;;  %vm1336_vm3 = vcmask 1043456   ;;  %s3556_s25 = smov 4  }
 0x132   : > { %3508 = vsyncadd (%p4853_p7), [#allocation15], 4294966512  ;;  %v544_v1 = vld [vmem:[%s447_s24] sm:$0xff]  ;;  %2826 = vmatprep.subr.mxu0 %v542_v0  ;;  %2980 = vmatprep.subr.mxu1 %v542_v0  ;;  %v641_v4 = vld [vmem:[%s3983_s9 + $0x28] sm:$0xff]  ;;  %s3557_s11 = smov 8   ;;  %vm3558_vm4 = vmmov 1  }
 0x133   : > { %v640_v2 = vld [vmem:[%s3983_s9 + $0x20] sm:$0xff]  ;;  %2827 = vmatpush3.msra.mxu0 %v542_v0  ;;  %2828 = vmatprep.mubr.msk.f32.mxu0 %vm4808_vm0, %v544_v1  ;;  %v637_v7 = vld [vmem:[%s3983_s9 + $0x8] sm:$0xff]  ;;  %v643_v8 = vld [vmem:[%s3983_s9 + $0x38] sm:$0xff]  ;;  %v4025_v14 = vshrl.u32 %v866_v13, 7  ;;  %vm1265_vm13 = vcmask 31744   ;;  %vm4807_vm14 = vcmask 97280  }
 0x134   : > { %v636_v5 = vld [vmem:[%s3983_s9] sm:$0xff]  ;;  %2981 = vmatpush3.msra.mxu1 %v542_v0  ;;  %2839 = vmatprep.mubr.msk.f32.mxu1 %vm4808_vm0, %v640_v2  ;;  %v638_v9 = vld [vmem:[%s3983_s9 + $0x10] sm:$0xff]  ;;  %v639_v10 = vld [vmem:[%s3983_s9 + $0x18] sm:$0xff]  ;;  %s4878_s21 = sld [smem:[#allocation26_spill]]  ;;  %s3559_s12 = smov 124  }
 0x135   : > { %2829 = vmatmul.mubr.msk.f32.vlgmr.msra.gmra.mrb[0].mxu0 %vm4808_vm0, %v545_v3  ;;  %2840 = vmatmul.mubr.msk.f32.vlgmr.msra.gmra.mrb[0].mxu1 %vm4808_vm0, %v641_v4  ;;  %v781_v11 = vld [vmem:[%s3989_s16] sm:$0xff]  ;;  %v782_v12 = vld [vmem:[%s3989_s16 + $0x8] sm:$0xff]  ;;  %v868_v18 = vadd.s32 8, %v4025_v14  ;;  %vm4806_vm1 = vcmp.lt.s32.totalorder %v4025_v14, 7  ;;  %v4040_v27 = vadd.s32 56, %v4025_v14  ;;  %vm4805_vm2 = vcmp.lt.s32.totalorder %v4025_v14, 1  ;;  %vm4101_vm5 = vmpackc.low %vm1336_vm3, %vm3558_vm4 }
 0x136   : > { %2831 = vmatprep.subr.mxu0 %v542_v0  ;;  %2833 = vmatprep.mubr.msk.f32.mxu0 %vm4808_vm0, %v636_v5  ;;  %v4027_v15 = vld [vmem:[#allocation10] ss:$0 sm:$0xff]  ;;  %v1290_v47 = vld [vmem:[#allocation11] sm:$0xff]  ;;  %v1291_v48 = vld [vmem:[#allocation11 + $0x8] sm:$0xf]  ;;  %v872_v5 = vadd.s32 40, %v4025_v14 }
 0x137   : > { %2832 = vmatpush3.msra.mxu0 %v542_v0  ;;  %2842 = vmatprep.mubr.msk.f32.mxu1 %vm4808_vm0, %v642_v6  ;;  %v890_v32 = vand.u32 15, %v868_v18  ;;  %v2956_v60 = vpack.c.bf16 %v1291_v48, %v1290_v47  ;;  %v932_v63 = vand.u32 15, %v4040_v27  ;;  %s4655_s23 = scalar_lea.vmem [#allocation17], %s2646_s19  ;;  %s3560_s29 = smov 16  }
 0x138   : > { %2845 = vmatprep.subr.mxu0 %v542_v0  ;;  %v918_v48 = vand.u32 15, %v872_v5  ;;  %v883_v5 = vand.u32 15, %v4025_v14  ;;  %s4971_s17 = sld [smem:[#allocation27_spill]]  ;;  %s4972_s22 = sld [smem:[#allocation32_spill]] }
 0x139   : > { %2834 = vmatmul.mubr.msk.f32.vlgmr.msra.gmra.mrb[2].mxu0 %vm4808_vm0, %v637_v7  ;;  %2843 = vmatmul.mubr.msk.f32.gmra.mrb[2].mxu1 %vm4808_vm0, %v643_v8  ;;  %vm4107_vm6 = vcmp.ne.s32.totalorder %v890_v32, 15  ;;  %vm4166_vm7 = vcmp.ne.s32.totalorder %v932_v63, 15  ;;  %s2425_s24 = sshll.u32 %s4655_s23, 4  ;;  %s4973_s5 = sld [smem:[#allocation39_spill]]  ;;  %s4702_s24 = int_to_ptr.vmem [resolvable:$true] %s2425_s24 }
 0x13a   : > { %2836 = vmatprep.mubr.msk.f32.mxu0 %vm4808_vm0, %v638_v9  ;;  %2846 = vmatpush3.msra.mxu0 %v542_v0  ;;  %vm4212_vm8 = vcmp.ne.s32.totalorder %v918_v48, 15  ;;  %vm4254_vm12 = vcmp.ne.s32.totalorder %v883_v5, 0  ;;  %p536_p1 = scmp.gt.s32.totalorder %s4878_s21, 0  ;;  %p539_p2 = scmp.lt.s32.totalorder %s4878_s21, 3 }
 0x13b   : > { %2958 = vmatprep.subr.msk.bf16.mxu0 %vm4101_vm5, %v2956_v60  ;;  %s2742_s26 = sshll.u32 %s4878_s21, 3  ;;  %s2409_s16 = scalar_lea.sflag [#allocation4], %s3971_s7 }
 0x13c   : > { %s537_s28 = scalar_select %p536_p1, 1, 0 }
 0x13d   : > { %2837 = vmatmul.mubr.msk.f32.gmra.mrb[4].mxu0 %vm4808_vm0, %v639_v10  ;;  %s540_s20 = scalar_select %p539_p2, 1, 0 }
 0x13e   : > { %2847 = vmatprep.mubr.msk.f32.mxu0 %vm4808_vm0, %v781_v11  ;;  %s538_s27 = scvt.s32.f32 %s537_s28  ;;  %s2737_s3 = sshll.u32 %s4971_s17, 5 }
 0x13f   : > { %s541_s30 = scvt.s32.f32 %s540_s20  ;;  %s2422_s1 = sadd.s32 %s2742_s26, %s2737_s3 }
 0x140   : > { %s2738_s13 = sshll.u32 %s2422_s1, 7  ;;  %p4974_p3 = scmp.ne.s32.totalorder %s4972_s22, 0 }
 0x141   : > { %2848 = vmatmul.mubr.msk.f32.vlgmr.msra.gmra.mrb[6].mxu0 %vm4808_vm0, %v782_v12  ;;  %s4707_s9 = scalar_lea.hbm %s4973_s5, %s2738_s13  ;;  %s3561_s21 = smov [#allocation17]  }
 0x142   : > { %2961 = vmatpush3.bf16.msk.msra.mxu0 %vm4101_vm5, %v2956_v60  ;;  %s3433_s28 = sshll.u32 %s3561_s21, 4  ;;  %s3434_s28 = int_to_ptr.vmem [resolvable:$false] %s3433_s28 }
 0x143   : > { %p3436_p5 = scmp.lt.s32.totalorder %s4702_s24, %s3434_s28 }
 0x208   : > { %v2830_v16 = vpop.f32.mrb[0].mxu0  ;;  %v2841_v17 = vpop.f32.mrb[0].mxu1 }
 0x209   : > { %v631_v19 = vadd.f32 %v2830_v16, %v4027_v15  ;;  %v760_v20 = vadd.f32 %v2841_v17, %v4027_v15  ;;  %v625_v21 = vpop.f32.mrb[1].mxu0  ;;  %v754_v22 = vpop.f32.mrb[1].mxu1 }
 0x20a   : > { %v626_v23 = vadd.f32 %v4027_v15, %v625_v21  ;;  %v755_v24 = vadd.f32 %v4027_v15, %v754_v22 }
 0x20b   : > { %v4035_v25 = vmax.f32 %v631_v19, 0.0  ;;  %v4037_v26 = vmax.f32 %v760_v20, 0.0 }
 0x20c   : > { %v4043_v28 = vmax.f32 %v626_v23, 0.0  ;;  %v4045_v29 = vmax.f32 %v755_v24, 0.0  ;;  %v2835_v30 = vpop.f32.mrb[2].mxu0  ;;  %v2844_v31 = vpop.f32.mrb[2].mxu1 }
 0x20d   : > { %v1048_v33 = vrot.slane %v4035_v25, 7  ;;  %v1109_v34 = vrot.slane %v4035_v25, 1  ;;  %v1054_v35 = vrot.slane %v4037_v26, 7  ;;  %v1115_v36 = vrot.slane %v4037_v26, 1  ;;  %1195 = vrot.lane.b32.xlu1 %v4037_v26, %s3556_s25  ;;  %v764_v37 = vpop.f32.mrb[3].mxu1  ;;  %1183 = vrot.lane.b32.xlu0 %v4035_v25, %s3556_s25  ;;  %v734_v38 = vpop.f32.mrb[3].mxu0 }
 0x20e   : > { %v1047_v39 = vrot.slane %v4043_v28, 7  ;;  %v1108_v40 = vrot.slane %v4043_v28, 1  ;;  %v1053_v41 = vrot.slane %v4045_v29, 7  ;;  %v1114_v42 = vrot.slane %v4045_v29, 1 }
 0x20f   : > { %v740_v43 = vadd.f32 %v2835_v30, %v4027_v15  ;;  %v770_v44 = vadd.f32 %v2844_v31, %v4027_v15  ;;  %v765_v45 = vadd.f32 %v4027_v15, %v764_v37  ;;  %v735_v46 = vadd.f32 %v4027_v15, %v734_v38 }
 0x210   : > { %v2838_v49 = vpop.f32.mrb[4].mxu0  ;;  %v1131_v50 = vsel %vm4806_vm1, %v1108_v40, %v1109_v34  ;;  %v1125_v51 = vsel %vm4806_vm1, %v1114_v42, %v1115_v36  ;;  %v4075_v52 = vsel %vm4805_vm2, %v1053_v41, %v1054_v35  ;;  %v4083_v53 = vsel %vm4805_vm2, %v1047_v39, %v1048_v33 }
 0x211   : > { %v4085_v54 = vmax.f32 %v740_v43, 0.0  ;;  %v4087_v55 = vmax.f32 %v765_v45, 0.0  ;;  %v4089_v56 = vmax.f32 %v735_v46, 0.0  ;;  %v744_v57 = vpop.f32.mrb[5].mxu0  ;;  %1181 = vrot.lane.b32.xlu0 %v4043_v28, %s3556_s25  ;;  %1229 = vrot.lane.b32.xlu1 %v1131_v50, %s3557_s11  ;;  %v750_v58 = vadd.f32 %v2838_v49, %v4027_v15 }
 0x212   : > { %v745_v59 = vadd.f32 %v4027_v15, %v744_v57  ;;  %v4097_v62 = vmax.f32 %v770_v44, 0.0  ;;  %v870_v49 = vadd.s32 24, %v4025_v14 }
 0x213   : > { %v1111_v61 = vrot.slane %v4085_v54, 1  ;;  %v1116_v1 = vrot.slane %v4087_v55, 1  ;;  %v1110_v2 = vrot.slane %v4089_v56, 1  ;;  %v1050_v6 = vrot.slane %v4085_v54, 7 }
 0x214   : > { %v2849_v3 = vpop.f32.mrb[6].mxu0  ;;  %v776_v7 = vmax.f32 %v750_v58, 0.0  ;;  %v775_v8 = vmax.f32 %v745_v59, 0.0  ;;  %v1117_v17 = vrot.slane %v4097_v62, 1  ;;  %v1056_v21 = vrot.slane %v4097_v62, 7 }
 0x215   : > { %v861_v9 = vadd.f32 %v2849_v3, %v4027_v15  ;;  %1193 = vrot.lane.b32.xlu0 %v4045_v29, %s3556_s25  ;;  %1187 = vrot.lane.b32.xlu1 %v4085_v54, %s3556_s25  ;;  %v855_v10 = vpop.f32.mrb[7].mxu0  ;;  %v1130_v12 = vsel %vm4806_vm1, %v1109_v34, %v1110_v2  ;;  %v1124_v13 = vsel %vm4806_vm1, %v1115_v36, %v1116_v1  ;;  %v1049_v24 = vrot.slane %v4089_v56, 7 }
 0x216   : > { %v856_v11 = vadd.f32 %v4027_v15, %v855_v10  ;;  %v1129_v16 = vsel %vm4806_vm1, %v1110_v2, %v1111_v61  ;;  %v1052_v18 = vrot.slane %v776_v7, 7  ;;  %v1113_v19 = vrot.slane %v776_v7, 1 }
 0x217   : > { %v1112_v20 = vrot.slane %v775_v8, 1  ;;  %v1055_v15 = vrot.slane %v4087_v55, 7  ;;  %v865_v22 = vmax.f32 %v861_v9, 0.0  ;;  %v1051_v32 = vrot.slane %v775_v8, 7 }
 0x218   : > { %v864_v23 = vmax.f32 %v856_v11, 0.0  ;;  %v1126_v27 = vsel %vm4806_vm1, %v1113_v19, %v1114_v42  ;;  %v1158_v43 = vsel %vm4107_vm6, %v1130_v12, 0.0  ;;  %v1123_v44 = vsel %vm4806_vm1, %v1116_v1, %v1117_v17 }
 0x219   : > { %1241 = vrot.lane.b32.xlu0 %v1125_v51, %s3557_s11  ;;  %1191 = vrot.lane.b32.xlu1 %v776_v7, %s3556_s25  ;;  %v1128_v30 = vsel %vm4806_vm1, %v1111_v61, %v1112_v20  ;;  %v1127_v31 = vsel %vm4806_vm1, %v1112_v20, %v1113_v19  ;;  %v1058_v34 = vrot.slane %v865_v22, 7  ;;  %v1119_v36 = vrot.slane %v865_v22, 1 }
 0x21a   : > { %v1118_v37 = vrot.slane %v864_v23, 1  ;;  %v1057_v38 = vrot.slane %v864_v23, 7  ;;  %v4149_v42 = vsel %vm4805_vm2, %v1052_v18, %v1053_v41  ;;  %v4177_v28 = vsel %vm4805_vm2, %v1051_v32, %v1052_v18 }
 0x21b   : > { %v1132_v47 = vsel %vm4806_vm1, %v1119_v36, %v1108_v40  ;;  %v1071_v29 = vsel %vm4805_vm2, %v1058_v34, %v1047_v39  ;;  %v4173_v40 = vsel %vm4805_vm2, %v1049_v24, %v1050_v6  ;;  %v4183_v39 = vsel %vm4805_vm2, %v1048_v33, %v1049_v24 }
 0x21c   : > { %v1122_v45 = vsel %vm4806_vm1, %v1117_v17, %v1118_v37  ;;  %v1121_v46 = vsel %vm4806_vm1, %v1118_v37, %v1119_v36  ;;  %v4189_v50 = vsel %vm4805_vm2, %v1054_v35, %v1055_v15  ;;  %v4193_v51 = vsel %vm4805_vm2, %v1050_v6, %v1051_v32 }
 0x21d   : > { %1185 = vrot.lane.b32.xlu0 %v4089_v56, %s3556_s25  ;;  %1231 = vrot.lane.b32.xlu1 %v1158_v43, %s3557_s11  ;;  %v4197_v54 = vsel %vm4805_vm2, %v1055_v15, %v1056_v21  ;;  %v1164_v25 = vsel %vm4166_vm7, %v1124_v13, 0.0  ;;  %v4203_v33 = vsel %vm4805_vm2, %v1057_v38, %v1058_v34  ;;  %v4207_v26 = vsel %vm4805_vm2, %v1056_v21, %v1057_v38 }
 0x21e   : > { %v904_v56 = vand.u32 15, %v870_v49  ;;  %v1162_v57 = vsel %vm4212_vm8, %v1126_v27, 0.0  ;;  %v876_v59 = vadd.s32 72, %v4025_v14  ;;  %v878_v61 = vadd.s32 88, %v4025_v14 }
 0x21f   : > { %v1096_v10 = vsel %vm4254_vm12, %v1071_v29, 0.0  ;;  %v869_v20 = vadd.s32 16, %v4025_v14  ;;  %v871_v32 = vadd.s32 32, %v4025_v14  ;;  %v873_v34 = vadd.s32 48, %v4025_v14 }
 0x220   : > { %vm4220_vm9 = vcmp.ne.s32.totalorder %v904_v56, 15  ;;  %v946_v60 = vand.u32 15, %v876_v59  ;;  %v960_v1 = vand.u32 15, %v878_v61 }
 0x221   : > { %1197 = vrot.lane.b32.xlu0 %v4087_v55, %s3556_s25  ;;  %1243 = vrot.lane.b32.xlu1 %v1164_v25, %s3557_s11  ;;  %v1160_v55 = vsel %vm4220_vm9, %v1128_v30, 0.0  ;;  %v897_v15 = vand.u32 15, %v869_v20  ;;  %v911_v43 = vand.u32 15, %v871_v32 }
 0x222   : > { %vm4235_vm10 = vcmp.ne.s32.totalorder %v946_v60, 15  ;;  %vm4243_vm11 = vcmp.ne.s32.totalorder %v960_v1, 15  ;;  %v877_v60 = vadd.s32 80, %v4025_v14 }
 0x223   : > { %v1166_v2 = vsel %vm4235_vm10, %v1122_v45, 0.0  ;;  %v1168_v3 = vsel %vm4243_vm11, %v1132_v47, 0.0  ;;  %vm4268_vm15 = vcmp.ne.s32.totalorder %v897_v15, 0  ;;  %v925_v45 = vand.u32 15, %v873_v34 }
 0x224   : > { %vm4283_vm3 = vcmp.ne.s32.totalorder %v911_v43, 0 }
 0x225   : > { %1233 = vrot.lane.b32.xlu0 %v1129_v16, %s3557_s11  ;;  %1239 = vrot.lane.b32.xlu1 %v1162_v57, %s3557_s11  ;;  %vm4288_vm4 = vcmp.ne.s32.totalorder %v925_v45, 0  ;;  %v1100_v57 = vsel %vm4283_vm3, %v4193_v51, 0.0 }
 0x226   : > { %v1102_v61 = vsel %vm4288_vm4, %v4149_v42, 0.0 }
 0x229   : > { %1189 = vrot.lane.b32.xlu0 %v775_v8, %s3556_s25  ;;  %1235 = vrot.lane.b32.xlu1 %v1160_v55, %s3557_s11 }
 0x22d   : > { %1237 = vrot.lane.b32.xlu0 %v1127_v31, %s3557_s11  ;;  %1199 = vrot.lane.b32.xlu1 %v4097_v62, %s3556_s25 }
 0x231   : > { %1245 = vrot.lane.b32.xlu0 %v1123_v44, %s3557_s11  ;;  %1203 = vrot.lane.b32.xlu1 %v865_v22, %s3556_s25 }
 0x235   : > { %1201 = vrot.lane.b32.xlu0 %v864_v23, %s3556_s25  ;;  %1247 = vrot.lane.b32.xlu1 %v1166_v2, %s3557_s11 }
 0x239   : > { %1249 = vrot.lane.b32.xlu0 %v1121_v46, %s3557_s11  ;;  %1251 = vrot.lane.b32.xlu1 %v1168_v3, %s3557_s11  ;;  %v875_v46 = vadd.s32 64, %v4025_v14 }
 0x23b   : > { %v939_v56 = vand.u32 15, %v875_v46 }
 0x23d   : > { %vm4305_vm2 = vcmp.ne.s32.totalorder %v939_v56, 0  ;;  %v1779_v56 = vld [vmem:[#allocation14] sm:$0xff] }
 0x27f   : > { %v4252_v6 = vpop.permute.xlu1 %1195  ;;  %v1184_v7 = vpop.permute.xlu0 %1183 }
 0x280   : > { %v1267_v21 = vsel %vm1265_vm13, %v4083_v53, %v1184_v7  ;;  %v1098_v53 = vsel %vm4268_vm15, %v4183_v39, 0.0 }
 0x283   : > { %v1182_v9 = vpop.permute.xlu0 %1181  ;;  %v1230_v11 = vpop.permute.xlu1 %1229 }
 0x284   : > { %v1266_v12 = vsel %vm1265_vm13, %v1096_v10, %v1182_v9  ;;  %v1273_v10 = vsel %vm1265_vm13, %v4075_v52, %v4252_v6 }
 0x285   : > { %v1278_v13 = vsel %vm4808_vm0, %v1266_v12, %v1230_v11  ;;  %v1104_v11 = vsel %vm4305_vm2, %v4189_v50, 0.0 }
 0x286   : > { %2854 = vmatprep.mubr.msk.f32.mxu0 %vm4807_vm14, %v1278_v13 }
 0x287   : > { %v1194_v16 = vpop.permute.xlu0 %1193  ;;  %v1188_v17 = vpop.permute.xlu1 %1187 }
 0x288   : > { %v1269_v47 = vsel %vm1265_vm13, %v4173_v40, %v1188_v17  ;;  %v1272_v3 = vsel %vm1265_vm13, %v1102_v61, %v1194_v16 }
 0x28b   : > { %v1242_v18 = vpop.permute.xlu0 %1241  ;;  %v1192_v19 = vpop.permute.xlu1 %1191 }
 0x28c   : > { %v1271_v1 = vsel %vm1265_vm13, %v4177_v28, %v1192_v19  ;;  %v1284_v7 = vsel %vm4808_vm0, %v1272_v3, %v1242_v18  ;;  %v953_v28 = vand.u32 15, %v877_v60 }
 0x28e   : > { %vm4326_vm1 = vcmp.ne.s32.totalorder %v953_v28, 0 }
 0x28f   : > { %v1186_v22 = vpop.permute.xlu0 %1185  ;;  %v1232_v23 = vpop.permute.xlu1 %1231  ;;  %v1106_v19 = vsel %vm4326_vm1, %v4207_v26, 0.0  ;;  %v4344_v26 = vld [vmem:[#allocation13] ss:$0 sm:$0xff] }
 0x290   : > { %v1279_v24 = vsel %vm4808_vm0, %v1267_v21, %v1232_v23  ;;  %v1268_v36 = vsel %vm1265_vm13, %v1098_v53, %v1186_v22 }
 0x291   : > { %2855 = vmatmul.mubr.msk.f32.vlgmr.msra.gmra.mrb[8].mxu0 %vm4807_vm14, %v1279_v24 }
 0x293   : > { %v1198_v30 = vpop.permute.xlu0 %1197  ;;  %v1244_v31 = vpop.permute.xlu1 %1243 }
 0x294   : > { %v1274_v12 = vsel %vm1265_vm13, %v1104_v11, %v1198_v30  ;;  %v1285_v13 = vsel %vm4808_vm0, %v1273_v10, %v1244_v31  ;;  %v1514_v31 = vstv %s538_s27  ;;  %v2141_v10 = vld [vmem:[#allocation14 + $0x20] sm:$0xff]  ;;  %v2142_v11 = vld [vmem:[#allocation14 + $0x28] sm:$0xf]  ;;  %s3435_s27 = scalar_lea.vmem %s3434_s28, 2048 }
 0x297   : > { %v1234_v37 = vpop.permute.xlu0 %1233  ;;  %v1240_v38 = vpop.permute.xlu1 %1239 }
 0x298   : > { %v1280_v44 = vsel %vm4808_vm0, %v1268_v36, %v1234_v37  ;;  %v1283_v51 = vsel %vm4808_vm0, %v1271_v1, %v1240_v38 }
 0x299   : > { %2857 = vmatprep.mubr.msk.f32.mxu0 %vm4807_vm14, %v1280_v44 }
 0x29b   : > { %v1190_v48 = vpop.permute.xlu0 %1189  ;;  %v1236_v49 = vpop.permute.xlu1 %1235 }
 0x29c   : > { %v1281_v39 = vsel %vm4808_vm0, %v1269_v47, %v1236_v49  ;;  %v1270_v40 = vsel %vm1265_vm13, %v1100_v57, %v1190_v48  ;;  %v1780_v57 = vld [vmem:[#allocation14 + $0x8] sm:$0xf] }
 0x29d   : > { %2858 = vmatmul.mubr.msk.f32.gmra.mrb[10].mxu0 %vm4807_vm14, %v1281_v39 }
 0x29f   : > { %v1238_v55 = vpop.permute.xlu0 %1237  ;;  %v1200_v59 = vpop.permute.xlu1 %1199 }
 0x2a0   : > { %v1282_v2 = vsel %vm4808_vm0, %v1270_v40, %v1238_v55  ;;  %v1275_v17 = vsel %vm1265_vm13, %v4197_v54, %v1200_v59  ;;  %v2968_v40 = vpack.c.bf16 %v1780_v57, %v1779_v56 }
 0x2a1   : > { %2860 = vmatprep.mubr.msk.f32.mxu0 %vm4807_vm14, %v1282_v2 }
 0x2a2   : > { %2861 = vmatmul.mubr.msk.f32.gmra.mrb[12].mxu0 %vm4807_vm14, %v1283_v51  ;;  %2970 = vmatprep.subr.msk.bf16.mxu1 %vm4101_vm5, %v2968_v40  ;;  %v1782_v51 = vld [vmem:[#allocation14 + $0x10] sm:$0xff] }
 0x2a3   : > { %v1246_v42 = vpop.permute.xlu0 %1245  ;;  %v1204_v9 = vpop.permute.xlu1 %1203  ;;  %2863 = vmatprep.mubr.msk.f32.mxu0 %vm4807_vm14, %v1284_v7  ;;  %2973 = vmatpush3.bf16.msk.msra.mxu1 %vm4101_vm5, %v2968_v40  ;;  %v1783_v7 = vld [vmem:[#allocation14 + $0x18] sm:$0xf] }
 0x2a4   : > { %v1286_v16 = vsel %vm4808_vm0, %v1274_v12, %v1246_v42  ;;  %v1277_v54 = vsel %vm1265_vm13, %v4203_v33, %v1204_v9  ;;  %v2962_v42 = vpack.c.bf16 %v1783_v7, %v1782_v51 }
 0x2a6   : > { %2864 = vmatmul.mubr.msk.f32.gmra.mrb[14].mxu0 %vm4807_vm14, %v1285_v13  ;;  %2964 = vmatprep.subr.msk.bf16.mxu0 %vm4101_vm5, %v2962_v42 }
 0x2a7   : > { %v1202_v52 = vpop.permute.xlu0 %1201  ;;  %v1248_v6 = vpop.permute.xlu1 %1247  ;;  %2866 = vmatprep.mubr.msk.f32.mxu0 %vm4807_vm14, %v1286_v16  ;;  %2967 = vmatpush3.bf16.msk.msra.mxu0 %vm4101_vm5, %v2962_v42  ;;  %v4393_v16 = vpack.c.bf16 %v2142_v11, %v2141_v10 }
 0x2a8   : > { %v1287_v50 = vsel %vm4808_vm0, %v1275_v17, %v1248_v6  ;;  %v1276_v20 = vsel %vm1265_vm13, %v1106_v19, %v1202_v52  ;;  %v1501_v17 = vstv %s541_s30 }
 0x2a9   : > { %2976 = vmatprep.subr.msk.bf16.mxu1 %vm4101_vm5, %v4393_v16 }
 0x2aa   : > { %2867 = vmatmul.mubr.msk.f32.gmra.mrb[16].mxu0 %vm4807_vm14, %v1287_v50 }
 0x2ab   : > { %v1250_v21 = vpop.permute.xlu0 %1249  ;;  %v1252_v15 = vpop.permute.xlu1 %1251 }
 0x2ac   : > { %v1288_v22 = vsel %vm4808_vm0, %v1276_v20, %v1250_v21  ;;  %v1289_v23 = vsel %vm4808_vm0, %v1277_v54, %v1252_v15 }
 0x2ad   : > { %2869 = vmatprep.mubr.msk.f32.mxu0 %vm4807_vm14, %v1288_v22 }
 0x2ae   : > { %2870 = vmatmul.mubr.msk.f32.gmra.mrb[18].mxu0 %vm4807_vm14, %v1289_v23  ;;  %vm4881_vm14 = vcmp.lt.s32.totalorder %v4025_v14, 7 }
 0x2af   : > { %vm4882_vm0 = vmmov %vm4881_vm14 }
 0x364   : > { %v2856_v24 = vpop.f32.mrb[8].mxu0 }
 0x365   : > { %v1412_v33 = vadd.f32 %v2856_v24, %v4344_v26  ;;  %v1406_v30 = vpop.f32.mrb[9].mxu0 }
 0x366   : > { %v1407_v32 = vadd.f32 %v4344_v26, %v1406_v30 }
 0x367   : > { %v1466_v34 = vmax.f32 %v1412_v33, 0.0 }
 0x368   : > { %v1465_v36 = vmax.f32 %v1407_v32, 0.0 }
 0x369   : > { %v4348_v53 = vmul.f32 %v1514_v31, %v1466_v34 }
 0x36a   : > { %v4354_v37 = vmul.f32 %v1514_v31, %v1465_v36 }
 0x36b   : > { %1625 = vrot.lane.b32.xlu1 %v4348_v53, %s3556_s25  ;;  %1553 = vrot.lane.b32.xlu0 %v4348_v53, %s3559_s12  ;;  %v1684_v20 = vrot.slane %v4348_v53, 1 }
 0x36f   : > { %1551 = vrot.lane.b32.xlu0 %v4354_v37, %s3559_s12 }
 0x370   : > { %v2859_v38 = vpop.f32.mrb[10].mxu0 }
 0x371   : > { %v1422_v43 = vadd.f32 %v2859_v38, %v4344_v26  ;;  %v1416_v44 = vpop.f32.mrb[11].mxu0 }
 0x372   : > { %v1417_v45 = vadd.f32 %v4344_v26, %v1416_v44 }
 0x373   : > { %1623 = vrot.lane.b32.xlu0 %v4354_v37, %s3556_s25  ;;  %v4364_v47 = vmax.f32 %v1422_v43, 0.0 }
 0x374   : > { %v4362_v46 = vmax.f32 %v1417_v45, 0.0  ;;  %v1683_v45 = vrot.slane %v4354_v37, 1 }
 0x375   : > { %v2862_v48 = vpop.f32.mrb[12].mxu0  ;;  %v1686_v24 = vrot.slane %v4364_v47, 1 }
 0x376   : > { %v1426_v49 = vpop.f32.mrb[13].mxu0  ;;  %1555 = vrot.lane.b32.xlu1 %v4362_v46, %s3559_s12  ;;  %v1432_v55 = vadd.f32 %v2862_v48, %v4344_v26  ;;  %v1685_v54 = vrot.slane %v4362_v46, 1 }
 0x377   : > { %v1427_v39 = vadd.f32 %v4344_v26, %v1426_v49  ;;  %1557 = vrot.lane.b32.xlu0 %v4364_v47, %s3559_s12 }
 0x378   : > { %v4383_v1 = vmax.f32 %v1432_v55, 0.0  ;;  %v1704_v22 = vsel %vm4881_vm14, %v1684_v20, %v1685_v54  ;;  %vm4887_vm14 = vmmov %vm4882_vm0 }
 0x379   : > { %v4373_v59 = vmax.f32 %v1427_v39, 0.0  ;;  %v2865_v60 = vpop.f32.mrb[14].mxu0  ;;  %v1708_v33 = vsel %vm4107_vm6, %v1704_v22, 0.0  ;;  %vm4883_vm6 = vmmov %vm4882_vm0 }
 0x37a   : > { %v1436_v61 = vpop.f32.mrb[15].mxu0  ;;  %v1442_v9 = vadd.f32 %v2865_v60, %v4344_v26  ;;  %v1688_v34 = vrot.slane %v4383_v1, 1 }
 0x37b   : > { %1559 = vrot.lane.b32.xlu1 %v4373_v59, %s3559_s12  ;;  %1627 = vrot.lane.b32.xlu0 %v4362_v46, %s3556_s25  ;;  %v1437_v19 = vadd.f32 %v4344_v26, %v1436_v61  ;;  %v1687_v23 = vrot.slane %v4373_v59, 1 }
 0x37c   : > { %v4400_v6 = vmax.f32 %v1442_v9, 0.0 }
 0x37d   : > { %v2868_v2 = vpop.f32.mrb[16].mxu0  ;;  %v4411_v21 = vmax.f32 %v1437_v19, 0.0  ;;  %v1702_v31 = vsel %vm4882_vm0, %v1686_v24, %v1687_v23 }
 0x37e   : > { %v1446_v3 = vpop.f32.mrb[17].mxu0  ;;  %v1710_v36 = vsel %vm4220_vm9, %v1702_v31, 0.0  ;;  %v1690_v43 = vrot.slane %v4400_v6, 1  ;;  %v1452_v48 = vadd.f32 %v2868_v2, %v4344_v26  ;;  %vm4884_vm9 = vmmov %vm4882_vm0 }
 0x37f   : > { %1561 = vrot.lane.b32.xlu0 %v4383_v1, %s3559_s12  ;;  %v1447_v15 = vadd.f32 %v4344_v26, %v1446_v3  ;;  %v1689_v32 = vrot.slane %v4411_v21, 1  ;;  %v1705_v35 = vsel %vm4884_vm9, %v1683_v45, %v1684_v20  ;;  %vm4889_vm9 = vmmov %vm4882_vm0 }
 0x380   : > { %v4457_v39 = vmax.f32 %v1452_v48, 0.0 }
 0x381   : > { %v2871_v28 = vpop.f32.mrb[18].mxu0  ;;  %v4424_v30 = vmax.f32 %v1447_v15, 0.0  ;;  %v1700_v4 = vsel %vm4883_vm6, %v1688_v34, %v1689_v32  ;;  %v1699_v60 = vsel %vm4887_vm14, %v1689_v32, %v1690_v43  ;;  %vm4888_vm6 = vmmov %vm4882_vm0 }
 0x382   : > { %v1462_v12 = vadd.f32 %v2871_v28, %v4344_v26  ;;  %v1456_v13 = vpop.f32.mrb[19].mxu0  ;;  %v1712_v44 = vsel %vm4212_vm8, %v1700_v4, 0.0  ;;  %vm4885_vm8 = vmmov %vm4882_vm0 }
 0x383   : > { %1631 = vrot.lane.b32.xlu0 %v4373_v59, %s3556_s25  ;;  %v1691_v38 = vrot.slane %v4424_v30, 1  ;;  %v1457_v56 = vadd.f32 %v4344_v26, %v1456_v13  ;;  %v1703_v57 = vsel %vm4885_vm8, %v1685_v54, %v1686_v24  ;;  %v1692_v26 = vrot.slane %v4457_v39, 1  ;;  %vm4890_vm8 = vmmov %vm4882_vm0 }
 0x384   : > { %v1476_v52 = vmax.f32 %v1462_v12, 0.0 }
 0x385   : > { %v1698_v58 = vsel %vm4882_vm0, %v1690_v43, %v1691_v38  ;;  %v1475_v41 = vmax.f32 %v1457_v56, 0.0  ;;  %v1697_v61 = vsel %vm4888_vm6, %v1691_v38, %v1692_v26 }
 0x386   : > { %v4402_v50 = vmul.f32 %v1501_v17, %v1476_v52  ;;  %v1714_v49 = vsel %vm4166_vm7, %v1698_v58, 0.0  ;;  %vm4886_vm7 = vmmov %vm4882_vm0 }
 0x387   : > { %1565 = vrot.lane.b32.xlu0 %v4400_v6, %s3559_s12  ;;  %v1701_v40 = vsel %vm4886_vm7, %v1687_v23, %v1688_v34  ;;  %v4470_v55 = vmul.f32 %v1501_v17, %v1475_v41  ;;  %vm4893_vm7 = vcmask 97280  }
 0x388   : > { %1573 = vrot.lane.b32.xlu1 %v4402_v50, %s3559_s12  ;;  %v1694_v3 = vrot.slane %v4402_v50, 1 }
 0x389   : > { %v1693_v2 = vrot.slane %v4470_v55, 1 }
 0x38a   : > { %v1706_v9 = vsel %vm4890_vm8, %v1694_v3, %v1683_v45 }
 0x38b   : > { %1637 = vrot.lane.b32.xlu0 %v4400_v6, %s3556_s25  ;;  %v1695_v51 = vsel %vm4882_vm0, %v1693_v2, %v1694_v3  ;;  %v1696_v7 = vsel %vm4889_vm9, %v1692_v26, %v1693_v2  ;;  %v1718_v28 = vsel %vm4243_vm11, %v1706_v9, 0.0  ;;  %vm4892_vm11 = vcmask 64512  }
 0x38c   : > { %1629 = vrot.lane.b32.xlu1 %v4364_v47, %s3556_s25  ;;  %v1716_v42 = vsel %vm4235_vm10, %v1696_v7, 0.0  ;;  %vm4891_vm10 = vcmp.lt.s32.totalorder %v4025_v14, 1 }
 0x38d   : > { %vm4894_vm14 = vmmov %vm4891_vm10 }
 0x38e   : > { %vm4896_vm6 = vmmov %vm4891_vm10 }
 0x38f   : > { %1733 = vrot.lane.b32.xlu0 %v1708_v33, %s3557_s11  ;;  %vm4897_vm0 = vmmov %vm4896_vm6 }
 0x390   : > { %1563 = vrot.lane.b32.xlu1 %v4411_v21, %s3559_s12 }
 0x393   : > { %1737 = vrot.lane.b32.xlu0 %v1710_v36, %s3557_s11 }
 0x394   : > { %1633 = vrot.lane.b32.xlu1 %v4383_v1, %s3556_s25 }
 0x397   : > { %1741 = vrot.lane.b32.xlu0 %v1712_v44, %s3557_s11 }
 0x398   : > { %1635 = vrot.lane.b32.xlu1 %v4411_v21, %s3556_s25 }
 0x39b   : > { %1745 = vrot.lane.b32.xlu0 %v1714_v49, %s3557_s11 }
 0x39c   : > { %1731 = vrot.lane.b32.xlu1 %v1705_v35, %s3557_s11 }
 0x39f   : > { %1569 = vrot.lane.b32.xlu0 %v4457_v39, %s3559_s12 }
 0x3a0   : > { %1735 = vrot.lane.b32.xlu1 %v1703_v57, %s3557_s11 }
 0x3a3   : > { %1639 = vrot.lane.b32.xlu0 %v4424_v30, %s3556_s25 }
 0x3a4   : > { %1739 = vrot.lane.b32.xlu1 %v1701_v40, %s3557_s11 }
 0x3a7   : > { %1643 = vrot.lane.b32.xlu0 %v4470_v55, %s3556_s25 }
 0x3a8   : > { %1743 = vrot.lane.b32.xlu1 %v1699_v60, %s3557_s11 }
 0x3ab   : > { %1747 = vrot.lane.b32.xlu0 %v1697_v61, %s3557_s11 }
 0x3ac   : > { %1567 = vrot.lane.b32.xlu1 %v4424_v30, %s3559_s12 }
 0x3af   : > { %1751 = vrot.lane.b32.xlu0 %v1695_v51, %s3557_s11 }
 0x3b0   : > { %1571 = vrot.lane.b32.xlu1 %v4470_v55, %s3559_s12 }
 0x3b4   : > { %1641 = vrot.lane.b32.xlu1 %v4457_v39, %s3556_s25 }
 0x3b8   : > { %1645 = vrot.lane.b32.xlu1 %v4402_v50, %s3556_s25  ;;  %s3429_s25 = scalar_lea.vmem %s4702_s24, 1024 }
 0x3b9   : > { %p3430_p4 = scmp.ne.s32.totalorder %s4702_s24, %s3429_s25  ;;  %p3437_p11 = scmp.lt.s32.totalorder %s3435_s27, %s3429_s25 }
 0x3bb   : > { %p3431_p6 = pnand %p3430_p4, %p4974_p3  ;;  %p3438_p0 = por %p3437_p11, %p3436_p5 }
 0x3bc   : > { %1749 = vrot.lane.b32.xlu1 %v1716_v42, %s3557_s11 }
 0x3bd   : > { %p3432_p9 = pneg %p3431_p6 }
 0x3bf   : > { %p3439_p8 = pnand %p3438_p0, %p3432_p9 }
 0x3c0   : > { %1753 = vrot.lane.b32.xlu1 %v1718_v28, %s3557_s11 }
 0x3dd   : > { %v1554_v10 = vpop.permute.xlu0 %1553  ;;  %v1626_v12 = vpop.permute.xlu1 %1625 }
 0x3de   : > { %v1588_v52 = vrot.slane %v1554_v10, 7 }
 0x3e1   : > { %v1552_v11 = vpop.permute.xlu0 %1551 }
 0x3e2   : > { %v1587_v32 = vrot.slane %v1552_v11, 7 }
 0x3e5   : > { %v1624_v13 = vpop.permute.xlu0 %1623 }
 0x3e8   : > { %v1556_v17 = vpop.permute.xlu1 %1555 }
 0x3e9   : > { %v1589_v19 = vrot.slane %v1556_v17, 7  ;;  %v1558_v54 = vpop.permute.xlu0 %1557 }
 0x3ea   : > { %v1590_v34 = vrot.slane %v1558_v54, 7 }
 0x3eb   : > { %v1608_v63 = vsel %vm4891_vm10, %v1588_v52, %v1589_v19 }
 0x3ec   : > { %v1613_v20 = vsel %vm4268_vm15, %v1608_v63, 0.0  ;;  %vm4895_vm15 = vmmov %vm4891_vm10  ;;  %v1607_v57 = vsel %vm4897_vm0, %v1589_v19, %v1590_v34 }
 0x3ed   : > { %v1628_v15 = vpop.permute.xlu0 %1627  ;;  %v1560_v24 = vpop.permute.xlu1 %1559  ;;  %v1609_v38 = vsel %vm4895_vm15, %v1587_v32, %v1588_v52  ;;  %vm4901_vm10 = vmmov %vm4893_vm7 }
 0x3ee   : > { %v1661_v62 = vsel %vm1265_vm13, %v1613_v20, %v1628_v15  ;;  %v1591_v31 = vrot.slane %v1560_v24, 7  ;;  %v1660_v48 = vsel %vm1265_vm13, %v1609_v38, %v1626_v12  ;;  %vm4906_vm15 = vmmov %vm4901_vm10 }
 0x3ef   : > { %v1673_v22 = vsel %vm4892_vm11, %v1661_v62, %v1628_v15 }
 0x3f0   : > { %2876 = vmatprep.mubr.msk.f32.mxu0 %vm4893_vm7, %v1673_v22  ;;  %v1606_v4 = vsel %vm4894_vm14, %v1590_v34, %v1591_v31  ;;  %vm4905_vm14 = vmmov %vm4901_vm10 }
 0x3f1   : > { %v1562_v23 = vpop.permute.xlu0 %1561  ;;  %v1615_v44 = vsel %vm4283_vm3, %v1606_v4, 0.0  ;;  %vm4898_vm3 = vmmov %vm4892_vm11 }
 0x3f2   : > { %vm4899_vm9 = vmmov %vm4898_vm3  ;;  %v1592_v61 = vrot.slane %v1562_v23, 7 }
 0x3f3   : > { %vm4900_vm8 = vmmov %vm4898_vm3 }
 0x3f4   : > { %vm4902_vm11 = vmmov %vm4893_vm7 }
 0x3f5   : > { %v1632_v33 = vpop.permute.xlu0 %1631  ;;  %vm4903_vm7 = vmmov %vm4898_vm3 }
 0x3f6   : > { %v1663_v49 = vsel %vm1265_vm13, %v1615_v44, %v1632_v33  ;;  %v1672_v8 = vsel %vm4903_vm7, %v1660_v48, %v1626_v12 }
 0x3f7   : > { %v1675_v60 = vsel %vm4900_vm8, %v1663_v49, %v1632_v33 }
 0x3f9   : > { %v4511_v36 = vpop.permute.xlu0 %1565 }
 0x3fa   : > { %v4515_v27 = vpop.permute.xlu1 %1573  ;;  %v1594_v7 = vrot.slane %v4511_v36, 7 }
 0x3fb   : > { %v1598_v43 = vrot.slane %v4515_v27, 7 }
 0x3fd   : > { %v1610_v58 = vsel %vm4896_vm6, %v1598_v43, %v1587_v32  ;;  %v1638_v45 = vpop.permute.xlu0 %1637  ;;  %vm4907_vm6 = vmmov %vm4897_vm0 }
 0x3fe   : > { %v1611_v35 = vsel %vm4254_vm12, %v1610_v58, 0.0  ;;  %v1630_v56 = vpop.permute.xlu1 %1629  ;;  %vm4904_vm12 = vmmov %vm4901_vm10  ;;  %v1605_v9 = vsel %vm4907_vm6, %v1591_v31, %v1592_v61 }
 0x3ff   : > { %v1662_v29 = vsel %vm1265_vm13, %v1607_v57, %v1630_v56  ;;  %v1659_v41 = vsel %vm1265_vm13, %v1611_v35, %v1624_v13  ;;  %vm4908_vm0 = vmmov %vm4901_vm10 }
 0x400   : > { %v1674_v40 = vsel %vm4898_vm3, %v1662_v29, %v1630_v56  ;;  %v1671_v26 = vsel %vm4899_vm9, %v1659_v41, %v1624_v13  ;;  %vm4909_vm3 = vmmov %vm4907_vm6 }
 0x401   : > { %2877 = vmatmul.mubr.msk.f32.vlgmr.msra.gmra.mrb[20].mxu0 %vm4901_vm10, %v1674_v40  ;;  %2904 = vmatprep.mubr.msk.f32.mxu1 %vm4902_vm11, %v1671_v26  ;;  %v1734_v2 = vpop.permute.xlu0 %1733  ;;  %vm4910_vm9 = vmmov %vm4908_vm0 }
 0x402   : > { %v1564_v3 = vpop.permute.xlu1 %1563  ;;  %2879 = vmatprep.mubr.msk.f32.mxu0 %vm4904_vm12, %v1675_v60  ;;  %2905 = vmatmul.mubr.msk.f32.vlgmr.msra.gmra.mrb[4].mxu1 %vm4905_vm14, %v1672_v8  ;;  %vm4911_vm8 = vmmov %vm4909_vm3 }
 0x403   : > { %v1593_v51 = vrot.slane %v1564_v3, 7  ;;  %2979 = vmatpush3.bf16.msk.msra.mxu1 %vm4101_vm5, %v4393_v16  ;;  %2907 = vmatprep.mubr.msk.f32.mxu1 %vm4906_vm15, %v1673_v22  ;;  %vm4912_vm5 = vmmov %vm4903_vm7 }
 0x404   : > { %vm4913_vm10 = vmmov %vm4908_vm0 }
 0x405   : > { %v1603_v28 = vsel %vm4909_vm3, %v1593_v51, %v1594_v7  ;;  %v1604_v0 = vsel %vm4911_vm8, %v1592_v61, %v1593_v51  ;;  %v1738_v16 = vpop.permute.xlu0 %1737  ;;  %vm4914_vm11 = vmmov %vm4908_vm0 }
 0x406   : > { %v1634_v42 = vpop.permute.xlu1 %1633  ;;  %2908 = vmatmul.mubr.msk.f32.gmra.mrb[6].mxu1 %vm4908_vm0, %v1674_v40  ;;  %v1617_v13 = vsel %vm4288_vm4, %v1604_v0, 0.0  ;;  %v1666_v17 = vsel %vm1265_vm13, %v1603_v28, %v1638_v45  ;;  %vm4915_vm7 = vmmov %vm4912_vm5  ;;  %v4649_v0 = vld [vmem:[#allocation16] ss:$0 sm:$0xff] }
 0x407   : > { %v1664_v10 = vsel %vm1265_vm13, %v1605_v9, %v1634_v42  ;;  %2910 = vmatprep.mubr.msk.f32.mxu1 %vm4910_vm9, %v1675_v60  ;;  %vm4916_vm12 = vmmov %vm4908_vm0 }
 0x408   : > { %v1676_v11 = vsel %vm4912_vm5, %v1664_v10, %v1634_v42  ;;  %vm4917_vm14 = vmmov %vm4908_vm0 }
 0x409   : > { %2880 = vmatmul.mubr.msk.f32.gmra.mrb[22].mxu0 %vm4913_vm10, %v1676_v11  ;;  %vm4918_vm15 = vmmov %vm4912_vm5  ;;  %v1742_v63 = vpop.permute.xlu0 %1741 }
 0x40a   : > { %v1636_v12 = vpop.permute.xlu1 %1635  ;;  %2911 = vmatmul.mubr.msk.f32.gmra.mrb[8].mxu1 %vm4914_vm11, %v1676_v11  ;;  %v1678_v54 = vsel %vm4918_vm15, %v1666_v17, %v1638_v45  ;;  %vm4919_vm6 = vmmov %vm4908_vm0 }
 0x40b   : > { %v1665_v52 = vsel %vm1265_vm13, %v1617_v13, %v1636_v12  ;;  %vm4920_vm4 = vmmov %vm4912_vm5 }
 0x40c   : > { %v1677_v19 = vsel %vm4915_vm7, %v1665_v52, %v1636_v12  ;;  %vm4921_vm3 = vmmov %vm4908_vm0 }
 0x40d   : > { %2882 = vmatprep.mubr.msk.f32.mxu0 %vm4916_vm12, %v1677_v19  ;;  %2913 = vmatprep.mubr.msk.f32.mxu1 %vm4917_vm14, %v1677_v19  ;;  %vm4922_vm9 = vmmov %vm4920_vm4  ;;  %v1746_v23 = vpop.permute.xlu0 %1745 }
 0x40e   : > { %2883 = vmatmul.mubr.msk.f32.gmra.mrb[24].mxu0 %vm4919_vm6, %v1678_v54  ;;  %2914 = vmatmul.mubr.msk.f32.gmra.mrb[10].mxu1 %vm4908_vm0, %v1678_v54  ;;  %v1732_v25 = vpop.permute.xlu1 %1731  ;;  %v1768_v15 = vsel %vm4922_vm9, %v4348_v53, %v1734_v2  ;;  %vm4923_vm8 = vmmov %vm4908_vm0 }
 0x40f   : > { %v1767_v20 = vsel %vm4920_vm4, %v4354_v37, %v1732_v25  ;;  %vm4924_vm5 = vmmov %vm4920_vm4 }
 0x410   : > { %2916 = vmatprep.mubr.msk.f32.mxu1 %vm4921_vm3, %v1767_v20  ;;  %vm4925_vm10 = vmmov %vm4908_vm0 }
 0x411   : > { %vm4926_vm11 = vmmov %vm4920_vm4  ;;  %v1570_v31 = vpop.permute.xlu0 %1569 }
 0x412   : > { %2917 = vmatmul.mubr.msk.f32.gmra.mrb[12].mxu1 %vm4923_vm8, %v1768_v15  ;;  %v1736_v62 = vpop.permute.xlu1 %1735  ;;  %v1770_v24 = vsel %vm4926_vm11, %v4364_v47, %v1738_v16  ;;  %vm4927_vm7 = vmmov %vm4908_vm0  ;;  %v1596_v38 = vrot.slane %v1570_v31, 7 }
 0x413   : > { %v1769_v22 = vsel %vm4924_vm5, %v4362_v46, %v1736_v62  ;;  %vm4928_vm12 = vmmov %vm4920_vm4  ;;  %vm4937_vm5 = vcmp.lt.s32.totalorder %v4025_v14, 1 }
 0x414   : > { %2919 = vmatprep.mubr.msk.f32.mxu1 %vm4925_vm10, %v1769_v22  ;;  %vm4929_vm14 = vmmov %vm4908_vm0 }
 0x415   : > { %vm4930_vm15 = vmmov %vm4920_vm4  ;;  %v1640_v36 = vpop.permute.xlu0 %1639 }
 0x416   : > { %2920 = vmatmul.mubr.msk.f32.gmra.mrb[14].mxu1 %vm4927_vm7, %v1770_v24  ;;  %v1740_v37 = vpop.permute.xlu1 %1739  ;;  %v1772_v53 = vsel %vm4930_vm15, %v4383_v1, %v1742_v63  ;;  %vm4931_vm6 = vmmov %vm4908_vm0 }
 0x417   : > { %v1771_v33 = vsel %vm4928_vm12, %v4373_v59, %v1740_v37  ;;  %vm4932_vm0 = vmmov %vm4920_vm4 }
 0x418   : > { %2922 = vmatprep.mubr.msk.f32.mxu1 %vm4929_vm14, %v1771_v33  ;;  %vm4933_vm4 = vmmov %vm4921_vm3 }
 0x419   : > { %vm4934_vm3 = vmmov %vm4932_vm0  ;;  %v1644_v48 = vpop.permute.xlu0 %1643 }
 0x41a   : > { %2923 = vmatmul.mubr.msk.f32.gmra.mrb[16].mxu1 %vm4931_vm6, %v1772_v53  ;;  %v1744_v46 = vpop.permute.xlu1 %1743  ;;  %v1774_v47 = vsel %vm4934_vm3, %v4400_v6, %v1746_v23  ;;  %vm4935_vm9 = vmmov %vm4933_vm4 }
 0x41b   : > { %v1773_v32 = vsel %vm4932_vm0, %v4411_v21, %v1744_v46  ;;  %vm4936_vm8 = vmmov %vm4933_vm4 }
 0x41c   : > { %2925 = vmatprep.mubr.msk.f32.mxu1 %vm4933_vm4, %v1773_v32  ;;  %vm4938_vm10 = vmmov %vm4933_vm4 }
 0x41d   : > { %vm4939_vm11 = vmmov %vm4933_vm4  ;;  %v1748_v27 = vpop.permute.xlu0 %1747 }
 0x41e   : > { %2926 = vmatmul.mubr.msk.f32.gmra.mrb[18].mxu1 %vm4935_vm9, %v1774_v47  ;;  %v1568_v59 = vpop.permute.xlu1 %1567  ;;  %vm4940_vm7 = vmmov %vm4932_vm0 }
 0x41f   : > { %v1595_v34 = vrot.slane %v1568_v59, 7  ;;  %2932 = vmatprep.mubr.msk.f32.mxu1 %vm4936_vm8, %v1675_v60  ;;  %vm4941_vm12 = vmmov %vm4937_vm5 }
 0x420   : > { %vm4942_vm14 = vmmov %vm4933_vm4 }
 0x421   : > { %v1602_v1 = vsel %vm4937_vm5, %v1594_v7, %v1595_v34  ;;  %vm4944_vm15 = vmmov %vm4937_vm5  ;;  %v1752_v8 = vpop.permute.xlu0 %1751 }
 0x422   : > { %v1619_v4 = vsel %vm4305_vm2, %v1602_v1, 0.0  ;;  %2933 = vmatmul.mubr.msk.f32.vlgmr.msra.gmra.mrb[4].mxu1 %vm4938_vm10, %v1676_v11  ;;  %v1572_v21 = vpop.permute.xlu1 %1571  ;;  %vm4943_vm2 = vmmov %vm4933_vm4  ;;  %v1601_v49 = vsel %vm4944_vm15, %v1595_v34, %v1596_v38 }
 0x423   : > { %v1597_v44 = vrot.slane %v1572_v21, 7  ;;  %2935 = vmatprep.mubr.msk.f32.mxu1 %vm4939_vm11, %v1677_v19  ;;  %v1667_v6 = vsel %vm1265_vm13, %v1619_v4, %v1640_v36  ;;  %vm4945_vm6 = vmmov %vm4943_vm2 }
 0x424   : > { %v1679_v58 = vsel %vm4940_vm7, %v1667_v6, %v1640_v36  ;;  %vm4946_vm4 = vmmov %vm4943_vm2 }
 0x425   : > { %v1600_v45 = vsel %vm4941_vm12, %v1596_v38, %v1597_v44  ;;  %2885 = vmatprep.mubr.msk.f32.mxu0 %vm4942_vm14, %v1679_v58  ;;  %vm4947_vm3 = vmmov %vm4943_vm2 }
 0x426   : > { %v1621_v5 = vsel %vm4326_vm1, %v1600_v45, 0.0  ;;  %2936 = vmatmul.mubr.msk.f32.gmra.mrb[6].mxu1 %vm4943_vm2, %v1678_v54  ;;  %v1642_v35 = vpop.permute.xlu1 %1641  ;;  %vm4948_vm9 = vmmov %vm4943_vm2 }
 0x427   : > { %v1668_v56 = vsel %vm1265_vm13, %v1601_v49, %v1642_v35  ;;  %2938 = vmatprep.mubr.msk.f32.mxu1 %vm4945_vm6, %v1679_v58  ;;  %v1669_v57 = vsel %vm1265_vm13, %v1621_v5, %v1644_v48  ;;  %vm4949_vm1 = vmmov %vm4937_vm5 }
 0x428   : > { %v1680_v29 = vsel %vm4932_vm0, %v1668_v56, %v1642_v35  ;;  %v1599_v18 = vsel %vm4949_vm1, %v1597_v44, %v1598_v43  ;;  %vm4950_vm8 = vmmov %vm4932_vm0  ;;  %v1775_v43 = vsel %vm4932_vm0, %v4424_v30, %v1748_v27 }
 0x429   : > { %2886 = vmatmul.mubr.msk.f32.gmra.mrb[26].mxu0 %vm4946_vm4, %v1680_v29  ;;  %v1681_v40 = vsel %vm4950_vm8, %v1669_v57, %v1644_v48  ;;  %vm4951_vm5 = vmmov %vm4943_vm2 }
 0x42a   : > { %2888 = vmatprep.mubr.msk.f32.mxu0 %vm4947_vm3, %v1769_v22  ;;  %2939 = vmatmul.mubr.msk.f32.gmra.mrb[8].mxu1 %vm4948_vm9, %v1680_v29  ;;  %v1646_v41 = vpop.permute.xlu1 %1645  ;;  %vm4952_vm10 = vmmov %vm4932_vm0 }
 0x42b   : > { %v1670_v26 = vsel %vm1265_vm13, %v1599_v18, %v1646_v41  ;;  %2941 = vmatprep.mubr.msk.f32.mxu1 %vm4951_vm5, %v1681_v40  ;;  %vm4953_vm11 = vmmov %vm4943_vm2 }
 0x42c   : > { %v1682_v60 = vsel %vm4952_vm10, %v1670_v26, %v1646_v41  ;;  %vm4954_vm7 = vmmov %vm4943_vm2 }
 0x42d   : > { %2889 = vmatmul.mubr.msk.f32.gmra.mrb[28].mxu0 %vm4953_vm11, %v1770_v24  ;;  %vm4955_vm12 = vmmov %vm4943_vm2 }
 0x42e   : > { %2891 = vmatprep.mubr.msk.f32.mxu0 %vm4954_vm7, %v1771_v33  ;;  %2942 = vmatmul.mubr.msk.f32.gmra.mrb[10].mxu1 %vm4955_vm12, %v1682_v60  ;;  %vm4956_vm14 = vmmov %vm4943_vm2  ;;  %v1750_v14 = vpop.permute.xlu1 %1749 }
 0x42f   : > { %2944 = vmatprep.mubr.msk.f32.mxu1 %vm4956_vm14, %v1771_v33  ;;  %vm4957_vm15 = vmmov %vm4943_vm2 }
 0x430   : > { %vm4958_vm6 = vmmov %vm4943_vm2 }
 0x431   : > { %2892 = vmatmul.mubr.msk.f32.gmra.mrb[30].mxu0 %vm4943_vm2, %v1772_v53  ;;  %vm4959_vm13 = vmmov %vm4943_vm2 }
 0x432   : > { %2894 = vmatprep.mubr.msk.f32.mxu0 %vm4957_vm15, %v1773_v32  ;;  %2945 = vmatmul.mubr.msk.f32.gmra.mrb[12].mxu1 %vm4958_vm6, %v1772_v53  ;;  %vm4960_vm4 = vmmov %vm4943_vm2  ;;  %v1754_v3 = vpop.permute.xlu1 %1753  ;;  %vm2399_vm15 = vcmask 261248  }
 0x433   : > { %2947 = vmatprep.mubr.msk.f32.mxu1 %vm4959_vm13, %v1773_v32  ;;  %vm4961_vm3 = vmmov %vm4943_vm2 }
 0x434   : > { %vm4962_vm9 = vmmov %vm4943_vm2 }
 0x435   : > { %2895 = vmatmul.mubr.msk.f32.gmra.mrb[32].mxu0 %vm4960_vm4, %v1774_v47  ;;  %vm4963_vm1 = vmmov %vm4943_vm2  ;;  %vm2358_vm2 = vcmask 130048  }
 0x436   : > { %2897 = vmatprep.mubr.msk.f32.mxu0 %vm4961_vm3, %v1775_v43  ;;  %2948 = vmatmul.mubr.msk.f32.gmra.mrb[14].mxu1 %vm4962_vm9, %v1774_v47  ;;  %vm4964_vm8 = vmmov %vm4932_vm0 }
 0x437   : > { %2950 = vmatprep.mubr.msk.f32.mxu1 %vm4963_vm1, %v1775_v43  ;;  %v1776_v61 = vsel %vm4964_vm8, %v4457_v39, %v1750_v14  ;;  %vm4965_vm5 = vmmov %vm4963_vm1 }
 0x438   : > { %vm4966_vm10 = vmmov %vm4932_vm0 }
 0x439   : > { %2898 = vmatmul.mubr.msk.f32.gmra.mrb[34].mxu0 %vm4965_vm5, %v1776_v61  ;;  %v1777_v2 = vsel %vm4966_vm10, %v4470_v55, %v1752_v8  ;;  %vm4967_vm11 = vmmov %vm4963_vm1 }
 0x43a   : > { %2951 = vmatmul.mubr.msk.f32.gmra.mrb[16].mxu1 %vm4967_vm11, %v1776_v61  ;;  %vm4968_vm7 = vmmov %vm4963_vm1 }
 0x43b   : > { %2953 = vmatprep.mubr.msk.f32.mxu1 %vm4968_vm7, %v1777_v2  ;;  %vm4969_vm12 = vmmov %vm4932_vm0 }
 0x43c   : > { %v1778_v30 = vsel %vm4969_vm12, %v4402_v50, %v1754_v3  ;;  %vm4970_vm14 = vmmov %vm4963_vm1 }
 0x43e   : > { %2954 = vmatmul.mubr.msk.f32.gmra.mrb[18].mxu1 %vm4970_vm14, %v1778_v30 }
 0x4d4   : > { %v2878_v51 = vpop.f32.mrb[20].mxu0 }
 0x4d5   : > { %v1901_v7 = vpop.f32.mrb[21].mxu0 }
 0x4dc   : > { %v2881_v42 = vpop.f32.mrb[22].mxu0 }
 0x4dd   : > { %v1911_v9 = vpop.f32.mrb[23].mxu0 }
 0x4e1   : > { %v2884_v39 = vpop.f32.mrb[24].mxu0 }
 0x4e2   : > { %v1921_v28 = vpop.f32.mrb[25].mxu0 }
 0x4f5   : > { %v2934_v10 = vpop.f32.mrb[4].mxu1 }
 0x4f6   : > { %v2982_v55 = vadd.f32 %v2934_v10, %v2878_v51  ;;  %v2224_v16 = vpop.f32.mrb[5].mxu1 }
 0x4f7   : > { %v2983_v11 = vadd.f32 %v2224_v16, %v1901_v7 }
 0x4f8   : > { %v2327_v12 = vadd.f32 %v2982_v55, %v4649_v0 }
 0x4f9   : > { %v2326_v50 = vadd.f32 %v2983_v11, %v4649_v0  ;;  %v2937_v13 = vpop.f32.mrb[6].mxu1 }
 0x4fa   : > { %v2343_v17 = vmax.f32 %v2327_v12, 0.0  ;;  %v2984_v52 = vadd.f32 %v2937_v13, %v2881_v42  ;;  %v2234_v19 = vpop.f32.mrb[7].mxu1 }
 0x4fb   : > { %v2342_v54 = vmax.f32 %v2326_v50, 0.0  ;;  %v2985_v63 = vadd.f32 %v2234_v19, %v1911_v9 }
 0x4fc   : > { %2360 = vst.msk [vmem:[%s4655_s23 + $0x8] sm:$0xff] %vm2358_vm2, %v2343_v17  ;;  %v2329_v25 = vadd.f32 %v2984_v52, %v4649_v0  ;;  %v2887_v20 = vpop.f32.mrb[26].mxu0 }
 0x4fd   : > { %2359 = vst.msk [vmem:[%s4655_s23] sm:$0xff] %vm2358_vm2, %v2342_v54  ;;  %v2328_v15 = vadd.f32 %v2985_v63, %v4649_v0  ;;  %v1931_v62 = vpop.f32.mrb[27].mxu0  ;;  %v2940_v22 = vpop.f32.mrb[8].mxu1 }
 0x4fe   : > { %v2345_v23 = vmax.f32 %v2329_v25, 0.0  ;;  %v2986_v24 = vadd.f32 %v2940_v22, %v2884_v39  ;;  %v2244_v37 = vpop.f32.mrb[9].mxu1 }
 0x4ff   : > { %v2344_v33 = vmax.f32 %v2328_v15, 0.0  ;;  %v2987_v53 = vadd.f32 %v2244_v37, %v1921_v28 }
 0x500   : > { %2362 = vst.msk [vmem:[%s4655_s23 + $0x18] sm:$0xff] %vm2358_vm2, %v2345_v23  ;;  %v2331_v31 = vadd.f32 %v2986_v24, %v4649_v0  ;;  %v2890_v46 = vpop.f32.mrb[28].mxu0 }
 0x501   : > { %2361 = vst.msk [vmem:[%s4655_s23 + $0x10] sm:$0xff] %vm2358_vm2, %v2344_v33  ;;  %v2330_v32 = vadd.f32 %v2987_v53, %v4649_v0  ;;  %v1941_v47 = vpop.f32.mrb[29].mxu0  ;;  %v2943_v59 = vpop.f32.mrb[10].mxu1 }
 0x502   : > { %v2347_v34 = vmax.f32 %v2331_v31, 0.0  ;;  %v2988_v36 = vadd.f32 %v2943_v59, %v2887_v20  ;;  %v2254_v1 = vpop.f32.mrb[11].mxu1 }
 0x503   : > { %v2346_v4 = vmax.f32 %v2330_v32, 0.0  ;;  %v2989_v21 = vadd.f32 %v2254_v1, %v1931_v62 }
 0x504   : > { %2364 = vst.msk [vmem:[%s4655_s23 + $0x28] sm:$0xff] %vm2358_vm2, %v2347_v34  ;;  %v2333_v38 = vadd.f32 %v2988_v36, %v4649_v0  ;;  %v2893_v44 = vpop.f32.mrb[30].mxu0 }
 0x505   : > { %2363 = vst.msk [vmem:[%s4655_s23 + $0x20] sm:$0xff] %vm2358_vm2, %v2346_v4  ;;  %v2332_v6 = vadd.f32 %v2989_v21, %v4649_v0  ;;  %v1951_v58 = vpop.f32.mrb[31].mxu0  ;;  %v2946_v45 = vpop.f32.mrb[12].mxu1 }
 0x506   : > { %v2349_v48 = vmax.f32 %v2333_v38, 0.0  ;;  %v2990_v5 = vadd.f32 %v2946_v45, %v2890_v46  ;;  %v2264_v49 = vpop.f32.mrb[13].mxu1 }
 0x507   : > { %v2348_v35 = vmax.f32 %v2332_v6, 0.0  ;;  %v2991_v56 = vadd.f32 %v2264_v49, %v1941_v47 }
 0x508   : > { %2366 = vst.msk [vmem:[%s4655_s23 + $0x38] sm:$0xff] %vm2358_vm2, %v2349_v48  ;;  %v2335_v57 = vadd.f32 %v2990_v5, %v4649_v0  ;;  %v2896_v29 = vpop.f32.mrb[32].mxu0 }
 0x509   : > { %2365 = vst.msk [vmem:[%s4655_s23 + $0x30] sm:$0xff] %vm2358_vm2, %v2348_v35  ;;  %v2334_v18 = vadd.f32 %v2991_v56, %v4649_v0  ;;  %v1961_v41 = vpop.f32.mrb[33].mxu0  ;;  %v2949_v40 = vpop.f32.mrb[14].mxu1 }
 0x50a   : > { %v2351_v26 = vmax.f32 %v2335_v57, 0.0  ;;  %v2992_v60 = vadd.f32 %v2949_v40, %v2893_v44  ;;  %v2274_v27 = vpop.f32.mrb[15].mxu1 }
 0x50b   : > { %v2350_v14 = vmax.f32 %v2334_v18, 0.0  ;;  %v2993_v43 = vadd.f32 %v2274_v27, %v1951_v58 }
 0x50c   : > { %v2337_v8 = vadd.f32 %v2992_v60, %v4649_v0  ;;  %2377 = vrot.lane.b32.xlu1 %v2351_v26, %s3560_s29  ;;  %v2899_v61 = vpop.f32.mrb[34].mxu0 }
 0x50d   : > { %v2336_v2 = vadd.f32 %v2993_v43, %v4649_v0  ;;  %2375 = vrot.lane.b32.xlu0 %v2350_v14, %s3560_s29  ;;  %v1971_v3 = vpop.f32.mrb[35].mxu0  ;;  %v2952_v30 = vpop.f32.mrb[16].mxu1 }
 0x50e   : > { %v2353_v51 = vmax.f32 %v2337_v8, 0.0  ;;  %v2994_v7 = vadd.f32 %v2952_v30, %v2896_v29  ;;  %v2284_v42 = vpop.f32.mrb[17].mxu1 }
 0x50f   : > { %v2352_v9 = vmax.f32 %v2336_v2, 0.0  ;;  %v2995_v39 = vadd.f32 %v2284_v42, %v1961_v41 }
 0x510   : > { %v2339_v28 = vadd.f32 %v2994_v7, %v4649_v0  ;;  %2381 = vrot.lane.b32.xlu1 %v2353_v51, %s3560_s29 }
 0x511   : > { %v2338_v10 = vadd.f32 %v2995_v39, %v4649_v0  ;;  %2379 = vrot.lane.b32.xlu0 %v2352_v9, %s3560_s29  ;;  %v2955_v55 = vpop.f32.mrb[18].mxu1 }
 0x512   : > { %v2355_v16 = vmax.f32 %v2339_v28, 0.0  ;;  %v2996_v11 = vadd.f32 %v2955_v55, %v2899_v61  ;;  %v2294_v12 = vpop.f32.mrb[19].mxu1 }
 0x513   : > { %v2354_v50 = vmax.f32 %v2338_v10, 0.0  ;;  %v2997_v13 = vadd.f32 %v2294_v12, %v1971_v3 }
 0x514   : > { %v2341_v17 = vadd.f32 %v2996_v11, %v4649_v0  ;;  %2385 = vrot.lane.b32.xlu1 %v2355_v16, %s3560_s29 }
 0x515   : > { %v2340_v52 = vadd.f32 %v2997_v13, %v4649_v0  ;;  %2383 = vrot.lane.b32.xlu0 %v2354_v50, %s3560_s29 }
 0x516   : > { %v2357_v19 = vmax.f32 %v2341_v17, 0.0 }
 0x517   : > { %v2356_v54 = vmax.f32 %v2340_v52, 0.0 }
 0x518   : > { %2389 = vrot.lane.b32.xlu1 %v2357_v19, %s3560_s29 }
 0x519   : > { %2387 = vrot.lane.b32.xlu0 %v2356_v54, %s3560_s29 }
 0x57e   : > { %v2378_v63 = vpop.permute.xlu1 %2377 }
 0x57f   : > { %2401 = vst.msk [vmem:[%s4655_s23 + $0x8] sm:$0xff] %vm2399_vm15, %v2378_v63  ;;  %v2376_v25 = vpop.permute.xlu0 %2375 }
 0x580   : > { %2400 = vst.msk [vmem:[%s4655_s23] sm:$0xff] %vm2399_vm15, %v2376_v25 }
 0x582   : > { %v2382_v0 = vpop.permute.xlu1 %2381 }
 0x583   : > { %2403 = vst.msk [vmem:[%s4655_s23 + $0x18] sm:$0xff] %vm2399_vm15, %v2382_v0  ;;  %v2380_v20 = vpop.permute.xlu0 %2379 }
 0x584   : > { %2402 = vst.msk [vmem:[%s4655_s23 + $0x10] sm:$0xff] %vm2399_vm15, %v2380_v20 }
 0x586   : > { %v2386_v15 = vpop.permute.xlu1 %2385 }
 0x587   : > { %2405 = vst.msk [vmem:[%s4655_s23 + $0x28] sm:$0xff] %vm2399_vm15, %v2386_v15  ;;  %v2384_v62 = vpop.permute.xlu0 %2383 }
 0x588   : > { %2404 = vst.msk [vmem:[%s4655_s23 + $0x20] sm:$0xff] %vm2399_vm15, %v2384_v62 }
 0x58a   : > { %v2390_v22 = vpop.permute.xlu1 %2389 }
 0x58b   : > { %2407 = vst.msk [vmem:[%s4655_s23 + $0x38] sm:$0xff] %vm2399_vm15, %v2390_v22  ;;  %v2388_v23 = vpop.permute.xlu0 %2387 }
 0x58c   : > { %2406 = vst.msk [vmem:[%s4655_s23 + $0x30] sm:$0xff] %vm2399_vm15, %v2388_v23 }
 0x58d   : > { %3442 = shalt.err (!%p3439_p8)
}
 0x58e   : > { %s3443_s12 = scalar_lea.hbm %s4707_s9, 1024  ;;  %s3447_s23 = scalar_lea.hbm %s4973_s5, 8192 }
 0x58f   : > { %p3444_p10 = scmp.ne.s32.totalorder %s4707_s9, %s3443_s12  ;;  %p3448_p7 = scmp.lt.u32.totalorder %s4707_s9, %s4973_s5 }
 0x590   : > { %p3449_p1 = scmp.lt.u32.totalorder %s3447_s23, %s3443_s12  ;;  %p3451_p4 = scmp.lt.u32.totalorder %s3443_s12, %s4707_s9 }
 0x591   : > { %p3445_p12 = pnand %p3444_p10, %p4974_p3 }
 0x592   : > { %p3450_p2 = por %p3449_p1, %p3448_p7 }
 0x593   : > { %p3446_p13 = pneg %p3445_p12 }
 0x594   : > { %p3452_p6 = por %p3451_p4, %p3450_p2 }
 0x596   : > { %p3453_p9 = pnand %p3452_p6, %p3446_p13 }
 0x598   : > { %3456 = shalt.err (!%p3453_p9)
}
 0x599   : > { %s3562_s26 = smov 128  }
 0x59a   : > { %3044 = dma.vmem_to_hbm [thread:$0]  (%p4974_p3), %s4702_s24, 1024, %s4707_s9, %s2409_s16, %s3562_s26, %s3562_s26, %s3557_s11  }
 0x59b PF: > { %s4975_s3 = sld [smem:[#allocation28_spill]]  ;;  %s4976_s1 = sld [smem:[#allocation24_spill]] }
 0x59c   : > { %s4977_s13 = sld [smem:[#allocation33_spill]] }
 0x5a1   : > { %p3092_p5 = scmp.ge.s32.totalorder %s4975_s3, 2  ;;  %s2440_s18 = sand.u32 1, %s4976_s1  }
 0x5a2   : > { %p4978_p11 = scmp.ne.s32.totalorder %s4977_s13, 0  ;;  %s2441_s19 = scalar_lea.sflag [#allocation4], %s2440_s18 }
 0x5a4   : > { %p3076_p0 = pnand %p3092_p5, %p4978_p11 }
 0x5a6   : > { %3510 = dma.done.wait (!%p3076_p0), %s2441_s19, 1024  }
 0x5a7   : > { %3512 = vsyncadd (!%p3076_p0), %s2441_s19, 4294966272  ;;  %s31_s16 = sadd.s32 1, %s4975_s3   ;;  %s4979_s22 = sld [smem:[#allocation25_spill]] }
 0x5a8   : > { %p28_p8 = scmp.ge.s32.totalorder %s31_s16, 10   ;;  %s4980_s11 = sld [smem:[#allocation34_spill]] }
 0x5a9   : > { %s4981_s7 = sld [smem:[#allocation30_spill]]  ;;  %s4982_s24 = sld [smem:[#allocation31_spill]] }
 0x5aa   : > { %s4983_s30 = smov %s3519_s10  ;;  %s4985_s12 = smov %s3535_s14 }
 0x5ab   : > { %s4986_s13 = smov %s3539_s15  ;;  %30 = sbr.rel (!%p28_p8) target bundleno = 18 (0x12), region = 151 }
 0x5ad   : > { %s4984_s10 = smov %s4979_s22 }
 0x5af   : > { %s4987_s14 = smov %s4981_s7  ;;  %s4988_s15 = smov %s4982_s24 }
 0x5b2   :  { %2446 = vsyncpa [#allocation3], 1 }
 0x5b3   :  { %2448 = vsyncpa [#allocation3 + $0x1], 1 }
 0x5b4   :  { %2449 = vsyncpa [#allocation6], 1 }
 0x5b5   :  { %2451 = vsyncpa [#allocation6 + $0x1], 1 }
 0x5b6   :  { %2452 = vsyncpa [#allocation9], 1 }
 0x5b7   :  { %2453 = vsyncpa [#allocation12], 1 }
 0x5b8   :  { %2454 = vsyncpa [#allocation15], 1 }
 0x5b9   :  { %2455 = vsyncpa [#allocation4], 1 }
 0x5ba   :  { %2457 = vsyncpa [#allocation4 + $0x1], 1 }

</bundles_post_ra>
